<compile_context>
chip_gen: v7x
topology: tpu7x:2x2x1
jax: 0.10.0
libtpu: 0.0.40
codegen_flags: <defaults>
</compile_context>

<pallas_src>
import functools

import jax
import jax.numpy as jnp
import numpy as np
from jax.experimental import pallas as pl
from jax.experimental.pallas import tpu as pltpu


def _default_vmem_limit():
    """Generation-aware VMEM cap: ~75% of physical VMEM, with headroom."""
    try:
        cap = int(pltpu.get_tpu_info().vmem_capacity_bytes)
    except Exception:
        cap = 128 * 1024 * 1024
    return max(32 * 1024 * 1024, min((cap * 3) // 4, 112 * 1024 * 1024))


_VMEM_LIMIT = _default_vmem_limit()


def _tile(dim, desired, granule):
    """Largest multiple of `granule` dividing `dim` and <= desired, else full dim."""
    if dim <= desired:
        return dim
    if dim % granule == 0:
        t = (min(desired, dim) // granule) * granule
        while t >= granule:
            if dim % t == 0:
                return t
            t -= granule
    # TODO(synk): for shapes that neither divide evenly nor fit VMEM whole,
    # switch callers to a cdiv/padded grid instead of this full-dim fallback.
    return dim


# -----------------------------------------------------------------------------
# Kernels
# -----------------------------------------------------------------------------
def _matmul_bias_kernel(x_ref, w_ref, b_ref, o_ref, acc_ref):
    """Tiled matmul + bias, bf16 MXU operands, f32 accumulation."""
    k = pl.program_id(2)

    @pl.when(k == 0)
    def _():
        acc_ref[...] = jnp.zeros_like(acc_ref)

    acc_ref[...] += jnp.dot(
        x_ref[...].astype(jnp.bfloat16),
        w_ref[...].astype(jnp.bfloat16),
        preferred_element_type=jnp.float32,
    )

    @pl.when(k == pl.num_programs(2) - 1)
    def _():
        o_ref[...] = (acc_ref[...] + b_ref[...]).astype(o_ref.dtype)


def _attention_kernel(qkv_ref, o_ref, o_acc, *, scale, heads_per_block, head_dim):
    """Softmax attention for one (batch, head-group) block.

    qkv_ref : (1, S, 3, G, D) bf16 block
    o_ref   : (1, S, G*D)     bf16 block (single lane-dense store at the end)
    o_acc   : (S, G*D)        f32  VMEM scratch
    """
    G, D = heads_per_block, head_dim
    for g in range(G):
        # Per-head ref slices: only the needed (S, D) tiles are loaded; each
        # head's values die at the scratch store below, so only one SxS score
        # matrix is live at a time.
        q = qkv_ref[0, :, 0, g, :].astype(jnp.float32) * scale  # scale folded into q
        k = qkv_ref[0, :, 1, g, :]  # (S, D) bf16
        v = qkv_ref[0, :, 2, g, :]  # (S, D) bf16
        s = jax.lax.dot_general(
            q.astype(jnp.bfloat16), k, (((1,), (1,)), ((), ())),
            preferred_element_type=jnp.float32,
        )  # (S, S) f32, contract on D (no K transpose)
        m = jnp.max(s, axis=-1, keepdims=True)
        p = jnp.exp(s - m)
        denom = jnp.sum(p, axis=-1, keepdims=True)
        p = (p * pl.reciprocal(denom, approx=True)).astype(jnp.bfloat16)
        o = jnp.dot(p, v, preferred_element_type=jnp.float32)  # (S, D) f32
        o_acc[:, pl.ds(g * D, D)] = o
    # One dense (S, G*D) store instead of G masked sub-128-lane stores.
    o_ref[0] = o_acc[...].astype(o_ref.dtype)


def _matmul_ln_res_kernel(x_ref, w_ref, b_ref, res_ref, g_ref, bt_ref, o_ref, *, eps):
    """out_proj (full-K matmul) fused with bias + LayerNorm + residual epilogue."""
    y = jnp.dot(
        x_ref[...].astype(jnp.bfloat16),
        w_ref[...].astype(jnp.bfloat16),
        preferred_element_type=jnp.float32,
    ) + b_ref[...]
    mean = jnp.mean(y, axis=-1, keepdims=True)
    var = jnp.mean(jnp.square(y - mean), axis=-1, keepdims=True)
    yn = (y - mean) * jax.lax.rsqrt(var + eps)
    o_ref[...] = res_ref[...] + yn * g_ref[...] + bt_ref[...]


def _mlp_ln_res_kernel(x_ref, w1_ref, b1_ref, w2_ref, b2_ref, g_ref, bt_ref,
                       o_ref, acc_ref, *, eps):
    """fc1 -> quick_gelu -> fc2 tiled over I, fused LayerNorm + residual epilogue.

    x_ref is both the MLP input and the residual (single load per tile).
    """
    i = pl.program_id(1)

    @pl.when(i == 0)
    def _():
        acc_ref[...] = jnp.zeros_like(acc_ref)

    xb = x_ref[...].astype(jnp.bfloat16)
    h = jnp.dot(xb, w1_ref[...].astype(jnp.bfloat16),
                preferred_element_type=jnp.float32) + b1_ref[...]
    h = h * jax.nn.sigmoid(1.702 * h)  # quick_gelu (CLIP-style hidden_act), f32
    acc_ref[...] += jnp.dot(h.astype(jnp.bfloat16),
                            w2_ref[...].astype(jnp.bfloat16),
                            preferred_element_type=jnp.float32)

    @pl.when(i == pl.num_programs(1) - 1)
    def _():
        y = acc_ref[...] + b2_ref[...]
        mean = jnp.mean(y, axis=-1, keepdims=True)
        var = jnp.mean(jnp.square(y - mean), axis=-1, keepdims=True)
        yn = (y - mean) * jax.lax.rsqrt(var + eps)
        o_ref[...] = x_ref[...] + yn * g_ref[...] + bt_ref[...]


# -----------------------------------------------------------------------------
# Wrappers
# -----------------------------------------------------------------------------
def linear(x, w, b, out_dtype=jnp.bfloat16, tm=512, tn=768, tk=2048):
    """QKV projection: tiled matmul + bias (bf16 MXU, f32 accum)."""
    M, K = x.shape
    N = w.shape[1]
    tm = _tile(M, tm, 8)
    tn = _tile(N, tn, 128)
    tk = _tile(K, tk, 128)  # defaults to full K for typical hidden sizes
    cost = pl.CostEstimate(
        flops=2 * M * N * K,
        transcendentals=0,
        bytes_accessed=(M * K * x.dtype.itemsize + K * N * w.dtype.itemsize
                        + N * 4 + M * N * jnp.dtype(out_dtype).itemsize),
    )
    return pl.pallas_call(
        _matmul_bias_kernel,
        out_shape=jax.ShapeDtypeStruct((M, N), out_dtype),
        grid=(M // tm, N // tn, K // tk),
        in_specs=[
            pl.BlockSpec((tm, tk), lambda i, j, k: (i, k)),
            pl.BlockSpec((tk, tn), lambda i, j, k: (k, j)),
            pl.BlockSpec((1, tn), lambda i, j, k: (0, j)),
        ],
        out_specs=pl.BlockSpec((tm, tn), lambda i, j, k: (i, j)),
        scratch_shapes=[pltpu.VMEM((tm, tn), jnp.float32)],
        compiler_params=pltpu.CompilerParams(
            dimension_semantics=("parallel", "parallel", "arbitrary"),
            vmem_limit_bytes=_VMEM_LIMIT,
        ),
        cost_estimate=cost,
    )(x, w, b.reshape(1, N))


def attention(qkv, scale):
    """qkv: (B, S, 3, H, D) bf16 -> (B, S, H*D) bf16, no HBM head transposes."""
    B, S, three, H, D = qkv.shape
    assert three == 3
    # Head group of 8 keeps the group lane-width (8*D) 128-aligned (lane-dense
    # output blocks, bounded VMEM per grid step); otherwise fall back to all
    # heads so the block equals the full array dims (always legal).
    G = 8 if (H % 8 == 0 and (8 * D) % 128 == 0) else H
    kernel = functools.partial(_attention_kernel, scale=scale,
                               heads_per_block=G, head_dim=D)
    cost = pl.CostEstimate(
        flops=4 * B * H * S * S * D,
        transcendentals=B * H * S * S,
        bytes_accessed=qkv.size * qkv.dtype.itemsize + B * S * H * D * 2,
    )
    return pl.pallas_call(
        kernel,
        out_shape=jax.ShapeDtypeStruct((B, S, H * D), jnp.bfloat16),
        grid=(B, H // G),
        in_specs=[pl.BlockSpec((1, S, 3, G, D), lambda b, hg: (b, 0, 0, hg, 0))],
        out_specs=pl.BlockSpec((1, S, G * D), lambda b, hg: (b, 0, hg)),
        scratch_shapes=[pltpu.VMEM((S, G * D), jnp.float32)],
        compiler_params=pltpu.CompilerParams(
            dimension_semantics=("parallel", "parallel"),
            vmem_limit_bytes=_VMEM_LIMIT,
        ),
        cost_estimate=cost,
    )(qkv)


def linear_ln_residual(x, w, b, residual, gamma, beta, eps, tm=512):
    """out_proj + bias + LayerNorm + residual.  Full-K reduction per grid step:
    the (K, N) weight BlockSpec index is constant, so the weight is DMA'd once
    and stays resident in VMEM across all M tiles."""
    M, K = x.shape
    N = w.shape[1]
    tm = _tile(M, tm, 8)
    kernel = functools.partial(_matmul_ln_res_kernel, eps=eps)
    cost = pl.CostEstimate(
        flops=2 * M * N * K + 10 * M * N,
        transcendentals=M,
        bytes_accessed=(M * K * x.dtype.itemsize + K * N * w.dtype.itemsize
                        + 2 * M * N * 4 + 3 * N * 4),
    )
    return pl.pallas_call(
        kernel,
        out_shape=jax.ShapeDtypeStruct((M, N), jnp.float32),
        grid=(M // tm,),
        in_specs=[
            pl.BlockSpec((tm, K), lambda i: (i, 0)),
            pl.BlockSpec((K, N), lambda i: (0, 0)),   # resident weight
            pl.BlockSpec((1, N), lambda i: (0, 0)),
            pl.BlockSpec((tm, N), lambda i: (i, 0)),  # residual
            pl.BlockSpec((1, N), lambda i: (0, 0)),
            pl.BlockSpec((1, N), lambda i: (0, 0)),
        ],
        out_specs=pl.BlockSpec((tm, N), lambda i: (i, 0)),
        compiler_params=pltpu.CompilerParams(
            dimension_semantics=("parallel",),
            vmem_limit_bytes=_VMEM_LIMIT,
        ),
        cost_estimate=cost,
    )(x, w, b.reshape(1, N), residual, gamma.reshape(1, N), beta.reshape(1, N))


def mlp_ln_residual(x, w1, b1, w2, b2, gamma, beta, eps, tm=512, ti=512):
    """fc1 -> quick_gelu -> fc2 + LayerNorm + residual, reduction over I."""
    M, E = x.shape
    I = w1.shape[1]
    tm = _tile(M, tm, 8)     # large tm amortizes fc1/fc2 weight streaming
    ti = _tile(I, ti, 128)   # reduction over I bounds VMEM
    kernel = functools.partial(_mlp_ln_res_kernel, eps=eps)
    cost = pl.CostEstimate(
        flops=4 * M * E * I + 12 * M * E,
        transcendentals=M * I + M,
        bytes_accessed=(M * E * 4 + E * I * 2 + I * E * 2
                        + (I + 3 * E) * 4 + M * E * 4),
    )
    return pl.pallas_call(
        kernel,
        out_shape=jax.ShapeDtypeStruct((M, E), jnp.float32),
        grid=(M // tm, I // ti),
        in_specs=[
            pl.BlockSpec((tm, E), lambda m, i: (m, 0)),
            pl.BlockSpec((E, ti), lambda m, i: (0, i)),
            pl.BlockSpec((1, ti), lambda m, i: (0, i)),
            pl.BlockSpec((ti, E), lambda m, i: (i, 0)),
            pl.BlockSpec((1, E), lambda m, i: (0, 0)),
            pl.BlockSpec((1, E), lambda m, i: (0, 0)),
            pl.BlockSpec((1, E), lambda m, i: (0, 0)),
        ],
        out_specs=pl.BlockSpec((tm, E), lambda m, i: (m, 0)),
        scratch_shapes=[pltpu.VMEM((tm, E), jnp.float32)],
        compiler_params=pltpu.CompilerParams(
            dimension_semantics=("parallel", "arbitrary"),
            vmem_limit_bytes=_VMEM_LIMIT,
        ),
        cost_estimate=cost,
    )(x, w1, b1.reshape(1, I), w2, b2.reshape(1, E),
      gamma.reshape(1, E), beta.reshape(1, E))


# -----------------------------------------------------------------------------
# Encoder
# -----------------------------------------------------------------------------
def encoder_layer(x, p, cfg):
    B, S, E = x.shape
    H, D = cfg["num_heads"], cfg["head_dim"]
    eps = cfg["layer_norm_eps"]
    scale = D ** (-0.5)

    x2 = x.reshape(B * S, E)  # f32 residual stream

    # --- self attention branch ---
    qkv = linear(x2, p["qkv_w"], p["qkv_b"], out_dtype=jnp.bfloat16)  # (B*S, 3E)
    qkv = qkv.reshape(B, S, 3, H, D)                                  # free reshape
    attn = attention(qkv, scale)                                      # (B, S, E) bf16
    attn = attn.reshape(B * S, E)                                     # free reshape
    h = linear_ln_residual(attn, p["out_w"], p["out_b"], x2,
                           p["ln1_g"], p["ln1_b"], eps)               # (B*S, E) f32

    # --- MLP branch (fused with LN2 + residual) ---
    out = mlp_ln_residual(h, p["fc1_w"], p["fc1_b"], p["fc2_w"], p["fc2_b"],
                          p["ln2_g"], p["ln2_b"], eps)
    return out.reshape(B, S, E)


def step3_vision_encoder(inputs_embeds, params, cfg):
    h = inputs_embeds
    for p in params:
        h = encoder_layer(h, p, cfg)
    return h


# -----------------------------------------------------------------------------
# Pure-JAX f32 reference (PyTorch module semantics)
# -----------------------------------------------------------------------------
def _ref_layernorm(x, g, b, eps):
    mean = jnp.mean(x, axis=-1, keepdims=True)
    var = jnp.mean((x - mean) ** 2, axis=-1, keepdims=True)
    return (x - mean) * jax.lax.rsqrt(var + eps) * g + b


def ref_encoder(x, params, cfg):
    H, D = cfg["num_heads"], cfg["head_dim"]
    eps = cfg["layer_norm_eps"]
    scale = D ** (-0.5)
    for p in params:
        B, S, E = x.shape
        qkv_w = p["qkv_w"].astype(jnp.float32)
        out_w = p["out_w"].astype(jnp.float32)
        fc1_w = p["fc1_w"].astype(jnp.float32)
        fc2_w = p["fc2_w"].astype(jnp.float32)
        qkv = x @ qkv_w + p["qkv_b"]
        q, k, v = jnp.split(qkv, 3, axis=-1)
        q = q.reshape(B, S, H, D).transpose(0, 2, 1, 3)
        k = k.reshape(B, S, H, D).transpose(0, 2, 1, 3)
        v = v.reshape(B, S, H, D).transpose(0, 2, 1, 3)
        s = jnp.einsum("bhqd,bhkd->bhqk", q, k) * scale
        a = jax.nn.softmax(s, axis=-1)
        o = jnp.einsum("bhqk,bhkd->bhqd", a, v)
        o = o.transpose(0, 2, 1, 3).reshape(B, S, E)
        o = o @ out_w + p["out_b"]
        x = x + _ref_layernorm(o, p["ln1_g"], p["ln1_b"], eps)
        hid = x @ fc1_w + p["fc1_b"]
        hid = hid * jax.nn.sigmoid(1.702 * hid)
        hid = hid @ fc2_w + p["fc2_b"]
        x = x + _ref_layernorm(hid, p["ln2_g"], p["ln2_b"], eps)
    return x


# -----------------------------------------------------------------------------
# Parameter init + main
# -----------------------------------------------------------------------------
def init_params(key, cfg):
    E = cfg["hidden_size"]
    I = cfg["intermediate_size"]
    params = []
    for _ in range(cfg["num_hidden_layers"]):
        keys = jax.random.split(key, 9)
        key = keys[0]
        std = 0.02
        p = {
            # weights stored in bf16 (MXU-native); biases / LN params in f32
            "qkv_w": (std * jax.random.normal(keys[1], (E, 3 * E), jnp.float32)
                      ).astype(jnp.bfloat16),
            "qkv_b": std * jax.random.normal(keys[2], (3 * E,), jnp.float32),
            "out_w": (std * jax.random.normal(keys[3], (E, E), jnp.float32)
                      ).astype(jnp.bfloat16),
            "out_b": std * jax.random.normal(keys[4], (E,), jnp.float32),
            "fc1_w": (std * jax.random.normal(keys[5], (E, I), jnp.float32)
                      ).astype(jnp.bfloat16),
            "fc1_b": std * jax.random.normal(keys[6], (I,), jnp.float32),
            "fc2_w": (std * jax.random.normal(keys[7], (I, E), jnp.float32)
                      ).astype(jnp.bfloat16),
            "fc2_b": std * jax.random.normal(keys[8], (E,), jnp.float32),
            "ln1_g": jnp.ones((E,), jnp.float32),
            "ln1_b": jnp.zeros((E,), jnp.float32),
            "ln2_g": jnp.ones((E,), jnp.float32),
            "ln2_b": jnp.zeros((E,), jnp.float32),
        }
        params.append(p)
    return params


if __name__ == "__main__":
    cfg = {
        "hidden_size": 32,
        "num_heads": 4,          # head_dim = 8
        "head_dim": 8,
        "intermediate_size": 128,
        "num_hidden_layers": 2,
        "layer_norm_eps": 1e-5,  # hidden_act assumed quick_gelu (CLIP-style)
    }
    B, S, E = 2, 8, cfg["hidden_size"]

    root = jax.random.PRNGKey(0)
    k_in, k_par = jax.random.split(root)
    inputs_embeds = jax.random.normal(k_in, (B, S, E), jnp.float32)
    params = init_params(k_par, cfg)

    encoder = jax.jit(functools.partial(step3_vision_encoder, cfg=cfg))
    out = jax.block_until_ready(encoder(inputs_embeds, params))

    ref = ref_encoder(inputs_embeds, params, cfg)
    assert out.shape == (B, S, E)
    # bf16 MXU operands + approx reciprocal -> loosened tolerance vs f32 reference
    np.testing.assert_allclose(np.asarray(out), np.asarray(ref),
                               atol=5e-2, rtol=5e-2)

    print("KERNEL_OK")
</pallas_src>

<mosaic_0001>
module attributes {stable_mosaic.version = 11 : i64} {
  func.func @_attention_kernel(%arg0: i32, %arg1: i32, %arg2: memref<1x8x3x4x8xbf16, #tpu.memory_space<vmem>>, %arg3: memref<1x8x32xbf16, #tpu.memory_space<vmem>>, %arg4: memref<8x32xf32, #tpu.memory_space<vmem>>) attributes {dimension_semantics = [#tpu.dimension_semantics<parallel>, #tpu.dimension_semantics<parallel>], iteration_bounds = array<i64: 2, 1>, scalar_prefetch = 0 : i64, scratch_operands = 1 : i64, tpu.core_type = #tpu.core_type<tc>, window_params = [{transform_indices = @transform_0, window_bounds = array<i64: 1, 8, 3, 4, 8>}, {transform_indices = @transform_1, window_bounds = array<i64: 1, 8, 32>}]} {
    %c0 = arith.constant 0 : index
    %c0_0 = arith.constant 0 : index
    %c0_1 = arith.constant 0 : index
    %c0_2 = arith.constant 0 : index
    %c0_3 = arith.constant 0 : index
    %0 = vector.load %arg2[%c0, %c0_0, %c0_1, %c0_2, %c0_3] : memref<1x8x3x4x8xbf16, #tpu.memory_space<vmem>>, vector<1x8x1x1x8xbf16>
    %1 = vector.shape_cast %0 : vector<1x8x1x1x8xbf16> to vector<8x8xbf16>
    %2 = arith.extf %1 : vector<8x8xbf16> to vector<8x8xf32>
    %cst = arith.constant 0.353553385 : f32
    %3 = vector.broadcast %cst : f32 to vector<8x8xf32>
    %4 = arith.mulf %2, %3 : vector<8x8xf32>
    %c0_4 = arith.constant 0 : index
    %c0_5 = arith.constant 0 : index
    %c1 = arith.constant 1 : index
    %c0_6 = arith.constant 0 : index
    %c0_7 = arith.constant 0 : index
    %5 = vector.load %arg2[%c0_4, %c0_5, %c1, %c0_6, %c0_7] : memref<1x8x3x4x8xbf16, #tpu.memory_space<vmem>>, vector<1x8x1x1x8xbf16>
    %6 = vector.shape_cast %5 : vector<1x8x1x1x8xbf16> to vector<8x8xbf16>
    %c0_8 = arith.constant 0 : index
    %c0_9 = arith.constant 0 : index
    %c2 = arith.constant 2 : index
    %c0_10 = arith.constant 0 : index
    %c0_11 = arith.constant 0 : index
    %7 = vector.load %arg2[%c0_8, %c0_9, %c2, %c0_10, %c0_11] : memref<1x8x3x4x8xbf16, #tpu.memory_space<vmem>>, vector<1x8x1x1x8xbf16>
    %8 = vector.shape_cast %7 : vector<1x8x1x1x8xbf16> to vector<8x8xbf16>
    %9 = arith.truncf %4 : vector<8x8xf32> to vector<8x8xbf16>
    %cst_12 = arith.constant dense<0.000000e+00> : vector<8x8xf32>
    %10 = tpu.matmul %9, %6, %cst_12 {dimension_numbers = #tpu.dot_dimension_numbers<[1], [1], [0], [0], [0, 0, 1, 0], [], []>} : vector<8x8xbf16>, vector<8x8xbf16>, vector<8x8xf32> -> vector<8x8xf32>
    %cst_13 = arith.constant dense<0xFF800000> : vector<8xf32>
    %11 = vector.multi_reduction <maximumf>, %10, %cst_13 [1] : vector<8x8xf32> to vector<8xf32>
    %12 = vector.shape_cast %11 : vector<8xf32> to vector<8x1xf32>
    %13 = vector.broadcast %12 : vector<8x1xf32> to vector<8x8xf32>
    %14 = arith.subf %10, %13 : vector<8x8xf32>
    %15 = math.exp %14 : vector<8x8xf32>
    %cst_14 = arith.constant dense<0.000000e+00> : vector<8xf32>
    %16 = vector.multi_reduction <add>, %15, %cst_14 [1] : vector<8x8xf32> to vector<8xf32>
    %17 = vector.shape_cast %16 : vector<8xf32> to vector<8x1xf32>
    %18 = tpu.reciprocal %17 {approx = true} : vector<8x1xf32> -> vector<8x1xf32>
    %19 = vector.broadcast %18 : vector<8x1xf32> to vector<8x8xf32>
    %20 = arith.mulf %15, %19 : vector<8x8xf32>
    %21 = arith.truncf %20 : vector<8x8xf32> to vector<8x8xbf16>
    %cst_15 = arith.constant dense<0.000000e+00> : vector<8x8xf32>
    %22 = tpu.matmul %21, %8, %cst_15 {dimension_numbers = #tpu.dot_dimension_numbers<[1], [0], [0], [1], [0, 0, 1, 1], [], []>} : vector<8x8xbf16>, vector<8x8xbf16>, vector<8x8xf32> -> vector<8x8xf32>
    %c0_16 = arith.constant 0 : index
    %c0_17 = arith.constant 0 : index
    %23 = vector.load %arg4[%c0_16, %c0_17] : memref<8x32xf32, #tpu.memory_space<vmem>>, vector<8x8xf32>
    tpu.vector_store %arg4[%c0_16, %c0_17], %22 {strides = array<i32>} : memref<8x32xf32, #tpu.memory_space<vmem>>, vector<8x8xf32>,
    %c0_18 = arith.constant 0 : index
    %c0_19 = arith.constant 0 : index
    %c0_20 = arith.constant 0 : index
    %c1_21 = arith.constant 1 : index
    %c0_22 = arith.constant 0 : index
    %24 = vector.load %arg2[%c0_18, %c0_19, %c0_20, %c1_21, %c0_22] : memref<1x8x3x4x8xbf16, #tpu.memory_space<vmem>>, vector<1x8x1x1x8xbf16>
    %25 = vector.shape_cast %24 : vector<1x8x1x1x8xbf16> to vector<8x8xbf16>
    %26 = arith.extf %25 : vector<8x8xbf16> to vector<8x8xf32>
    %cst_23 = arith.constant 0.353553385 : f32
    %27 = vector.broadcast %cst_23 : f32 to vector<8x8xf32>
    %28 = arith.mulf %26, %27 : vector<8x8xf32>
    %c0_24 = arith.constant 0 : index
    %c0_25 = arith.constant 0 : index
    %c1_26 = arith.constant 1 : index
    %c1_27 = arith.constant 1 : index
    %c0_28 = arith.constant 0 : index
    %29 = vector.load %arg2[%c0_24, %c0_25, %c1_26, %c1_27, %c0_28] : memref<1x8x3x4x8xbf16, #tpu.memory_space<vmem>>, vector<1x8x1x1x8xbf16>
    %30 = vector.shape_cast %29 : vector<1x8x1x1x8xbf16> to vector<8x8xbf16>
    %c0_29 = arith.constant 0 : index
    %c0_30 = arith.constant 0 : index
    %c2_31 = arith.constant 2 : index
    %c1_32 = arith.constant 1 : index
    %c0_33 = arith.constant 0 : index
    %31 = vector.load %arg2[%c0_29, %c0_30, %c2_31, %c1_32, %c0_33] : memref<1x8x3x4x8xbf16, #tpu.memory_space<vmem>>, vector<1x8x1x1x8xbf16>
    %32 = vector.shape_cast %31 : vector<1x8x1x1x8xbf16> to vector<8x8xbf16>
    %33 = arith.truncf %28 : vector<8x8xf32> to vector<8x8xbf16>
    %cst_34 = arith.constant dense<0.000000e+00> : vector<8x8xf32>
    %34 = tpu.matmul %33, %30, %cst_34 {dimension_numbers = #tpu.dot_dimension_numbers<[1], [1], [0], [0], [0, 0, 1, 0], [], []>} : vector<8x8xbf16>, vector<8x8xbf16>, vector<8x8xf32> -> vector<8x8xf32>
    %cst_35 = arith.constant dense<0xFF800000> : vector<8xf32>
    %35 = vector.multi_reduction <maximumf>, %34, %cst_35 [1] : vector<8x8xf32> to vector<8xf32>
    %36 = vector.shape_cast %35 : vector<8xf32> to vector<8x1xf32>
    %37 = vector.broadcast %36 : vector<8x1xf32> to vector<8x8xf32>
    %38 = arith.subf %34, %37 : vector<8x8xf32>
    %39 = math.exp %38 : vector<8x8xf32>
    %cst_36 = arith.constant dense<0.000000e+00> : vector<8xf32>
    %40 = vector.multi_reduction <add>, %39, %cst_36 [1] : vector<8x8xf32> to vector<8xf32>
    %41 = vector.shape_cast %40 : vector<8xf32> to vector<8x1xf32>
    %42 = tpu.reciprocal %41 {approx = true} : vector<8x1xf32> -> vector<8x1xf32>
    %43 = vector.broadcast %42 : vector<8x1xf32> to vector<8x8xf32>
    %44 = arith.mulf %39, %43 : vector<8x8xf32>
    %45 = arith.truncf %44 : vector<8x8xf32> to vector<8x8xbf16>
    %cst_37 = arith.constant dense<0.000000e+00> : vector<8x8xf32>
    %46 = tpu.matmul %45, %32, %cst_37 {dimension_numbers = #tpu.dot_dimension_numbers<[1], [0], [0], [1], [0, 0, 1, 1], [], []>} : vector<8x8xbf16>, vector<8x8xbf16>, vector<8x8xf32> -> vector<8x8xf32>
    %c0_38 = arith.constant 0 : index
    %c8 = arith.constant 8 : index
    %47 = vector.load %arg4[%c0_38, %c8] : memref<8x32xf32, #tpu.memory_space<vmem>>, vector<8x8xf32>
    tpu.vector_store %arg4[%c0_38, %c8], %46 {strides = array<i32>} : memref<8x32xf32, #tpu.memory_space<vmem>>, vector<8x8xf32>,
    %c0_39 = arith.constant 0 : index
    %c0_40 = arith.constant 0 : index
    %c0_41 = arith.constant 0 : index
    %c2_42 = arith.constant 2 : index
    %c0_43 = arith.constant 0 : index
    %48 = vector.load %arg2[%c0_39, %c0_40, %c0_41, %c2_42, %c0_43] : memref<1x8x3x4x8xbf16, #tpu.memory_space<vmem>>, vector<1x8x1x1x8xbf16>
    %49 = vector.shape_cast %48 : vector<1x8x1x1x8xbf16> to vector<8x8xbf16>
    %50 = arith.extf %49 : vector<8x8xbf16> to vector<8x8xf32>
    %cst_44 = arith.constant 0.353553385 : f32
    %51 = vector.broadcast %cst_44 : f32 to vector<8x8xf32>
    %52 = arith.mulf %50, %51 : vector<8x8xf32>
    %c0_45 = arith.constant 0 : index
    %c0_46 = arith.constant 0 : index
    %c1_47 = arith.constant 1 : index
    %c2_48 = arith.constant 2 : index
    %c0_49 = arith.constant 0 : index
    %53 = vector.load %arg2[%c0_45, %c0_46, %c1_47, %c2_48, %c0_49] : memref<1x8x3x4x8xbf16, #tpu.memory_space<vmem>>, vector<1x8x1x1x8xbf16>
    %54 = vector.shape_cast %53 : vector<1x8x1x1x8xbf16> to vector<8x8xbf16>
    %c0_50 = arith.constant 0 : index
    %c0_51 = arith.constant 0 : index
    %c2_52 = arith.constant 2 : index
    %c2_53 = arith.constant 2 : index
    %c0_54 = arith.constant 0 : index
    %55 = vector.load %arg2[%c0_50, %c0_51, %c2_52, %c2_53, %c0_54] : memref<1x8x3x4x8xbf16, #tpu.memory_space<vmem>>, vector<1x8x1x1x8xbf16>
    %56 = vector.shape_cast %55 : vector<1x8x1x1x8xbf16> to vector<8x8xbf16>
    %57 = arith.truncf %52 : vector<8x8xf32> to vector<8x8xbf16>
    %cst_55 = arith.constant dense<0.000000e+00> : vector<8x8xf32>
    %58 = tpu.matmul %57, %54, %cst_55 {dimension_numbers = #tpu.dot_dimension_numbers<[1], [1], [0], [0], [0, 0, 1, 0], [], []>} : vector<8x8xbf16>, vector<8x8xbf16>, vector<8x8xf32> -> vector<8x8xf32>
    %cst_56 = arith.constant dense<0xFF800000> : vector<8xf32>
    %59 = vector.multi_reduction <maximumf>, %58, %cst_56 [1] : vector<8x8xf32> to vector<8xf32>
    %60 = vector.shape_cast %59 : vector<8xf32> to vector<8x1xf32>
    %61 = vector.broadcast %60 : vector<8x1xf32> to vector<8x8xf32>
    %62 = arith.subf %58, %61 : vector<8x8xf32>
    %63 = math.exp %62 : vector<8x8xf32>
    %cst_57 = arith.constant dense<0.000000e+00> : vector<8xf32>
    %64 = vector.multi_reduction <add>, %63, %cst_57 [1] : vector<8x8xf32> to vector<8xf32>
    %65 = vector.shape_cast %64 : vector<8xf32> to vector<8x1xf32>
    %66 = tpu.reciprocal %65 {approx = true} : vector<8x1xf32> -> vector<8x1xf32>
    %67 = vector.broadcast %66 : vector<8x1xf32> to vector<8x8xf32>
    %68 = arith.mulf %63, %67 : vector<8x8xf32>
    %69 = arith.truncf %68 : vector<8x8xf32> to vector<8x8xbf16>
    %cst_58 = arith.constant dense<0.000000e+00> : vector<8x8xf32>
    %70 = tpu.matmul %69, %56, %cst_58 {dimension_numbers = #tpu.dot_dimension_numbers<[1], [0], [0], [1], [0, 0, 1, 1], [], []>} : vector<8x8xbf16>, vector<8x8xbf16>, vector<8x8xf32> -> vector<8x8xf32>
    %c0_59 = arith.constant 0 : index
    %c16 = arith.constant 16 : index
    %71 = vector.load %arg4[%c0_59, %c16] : memref<8x32xf32, #tpu.memory_space<vmem>>, vector<8x8xf32>
    tpu.vector_store %arg4[%c0_59, %c16], %70 {strides = array<i32>} : memref<8x32xf32, #tpu.memory_space<vmem>>, vector<8x8xf32>,
    %c0_60 = arith.constant 0 : index
    %c0_61 = arith.constant 0 : index
    %c0_62 = arith.constant 0 : index
    %c3 = arith.constant 3 : index
    %c0_63 = arith.constant 0 : index
    %72 = vector.load %arg2[%c0_60, %c0_61, %c0_62, %c3, %c0_63] : memref<1x8x3x4x8xbf16, #tpu.memory_space<vmem>>, vector<1x8x1x1x8xbf16>
    %73 = vector.shape_cast %72 : vector<1x8x1x1x8xbf16> to vector<8x8xbf16>
    %74 = arith.extf %73 : vector<8x8xbf16> to vector<8x8xf32>
    %cst_64 = arith.constant 0.353553385 : f32
    %75 = vector.broadcast %cst_64 : f32 to vector<8x8xf32>
    %76 = arith.mulf %74, %75 : vector<8x8xf32>
    %c0_65 = arith.constant 0 : index
    %c0_66 = arith.constant 0 : index
    %c1_67 = arith.constant 1 : index
    %c3_68 = arith.constant 3 : index
    %c0_69 = arith.constant 0 : index
    %77 = vector.load %arg2[%c0_65, %c0_66, %c1_67, %c3_68, %c0_69] : memref<1x8x3x4x8xbf16, #tpu.memory_space<vmem>>, vector<1x8x1x1x8xbf16>
    %78 = vector.shape_cast %77 : vector<1x8x1x1x8xbf16> to vector<8x8xbf16>
    %c0_70 = arith.constant 0 : index
    %c0_71 = arith.constant 0 : index
    %c2_72 = arith.constant 2 : index
    %c3_73 = arith.constant 3 : index
    %c0_74 = arith.constant 0 : index
    %79 = vector.load %arg2[%c0_70, %c0_71, %c2_72, %c3_73, %c0_74] : memref<1x8x3x4x8xbf16, #tpu.memory_space<vmem>>, vector<1x8x1x1x8xbf16>
    %80 = vector.shape_cast %79 : vector<1x8x1x1x8xbf16> to vector<8x8xbf16>
    %81 = arith.truncf %76 : vector<8x8xf32> to vector<8x8xbf16>
    %cst_75 = arith.constant dense<0.000000e+00> : vector<8x8xf32>
    %82 = tpu.matmul %81, %78, %cst_75 {dimension_numbers = #tpu.dot_dimension_numbers<[1], [1], [0], [0], [0, 0, 1, 0], [], []>} : vector<8x8xbf16>, vector<8x8xbf16>, vector<8x8xf32> -> vector<8x8xf32>
    %cst_76 = arith.constant dense<0xFF800000> : vector<8xf32>
    %83 = vector.multi_reduction <maximumf>, %82, %cst_76 [1] : vector<8x8xf32> to vector<8xf32>
    %84 = vector.shape_cast %83 : vector<8xf32> to vector<8x1xf32>
    %85 = vector.broadcast %84 : vector<8x1xf32> to vector<8x8xf32>
    %86 = arith.subf %82, %85 : vector<8x8xf32>
    %87 = math.exp %86 : vector<8x8xf32>
    %cst_77 = arith.constant dense<0.000000e+00> : vector<8xf32>
    %88 = vector.multi_reduction <add>, %87, %cst_77 [1] : vector<8x8xf32> to vector<8xf32>
    %89 = vector.shape_cast %88 : vector<8xf32> to vector<8x1xf32>
    %90 = tpu.reciprocal %89 {approx = true} : vector<8x1xf32> -> vector<8x1xf32>
    %91 = vector.broadcast %90 : vector<8x1xf32> to vector<8x8xf32>
    %92 = arith.mulf %87, %91 : vector<8x8xf32>
    %93 = arith.truncf %92 : vector<8x8xf32> to vector<8x8xbf16>
    %cst_78 = arith.constant dense<0.000000e+00> : vector<8x8xf32>
    %94 = tpu.matmul %93, %80, %cst_78 {dimension_numbers = #tpu.dot_dimension_numbers<[1], [0], [0], [1], [0, 0, 1, 1], [], []>} : vector<8x8xbf16>, vector<8x8xbf16>, vector<8x8xf32> -> vector<8x8xf32>
    %c0_79 = arith.constant 0 : index
    %c24 = arith.constant 24 : index
    %95 = vector.load %arg4[%c0_79, %c24] : memref<8x32xf32, #tpu.memory_space<vmem>>, vector<8x8xf32>
    tpu.vector_store %arg4[%c0_79, %c24], %94 {strides = array<i32>} : memref<8x32xf32, #tpu.memory_space<vmem>>, vector<8x8xf32>,
    %c0_80 = arith.constant 0 : index
    %c0_81 = arith.constant 0 : index
    %96 = vector.load %arg4[%c0_80, %c0_81] : memref<8x32xf32, #tpu.memory_space<vmem>>, vector<8x32xf32>
    %97 = arith.truncf %96 : vector<8x32xf32> to vector<8x32xbf16>
    %c0_82 = arith.constant 0 : index
    %c0_83 = arith.constant 0 : index
    %c0_84 = arith.constant 0 : index
    %98 = vector.load %arg3[%c0_82, %c0_83, %c0_84] : memref<1x8x32xbf16, #tpu.memory_space<vmem>>, vector<1x8x32xbf16>
    %99 = vector.shape_cast %98 : vector<1x8x32xbf16> to vector<8x32xbf16>
    %100 = vector.shape_cast %97 : vector<8x32xbf16> to vector<1x8x32xbf16>
    tpu.vector_store %arg3[%c0_82, %c0_83, %c0_84], %100 {strides = array<i32>} : memref<1x8x32xbf16, #tpu.memory_space<vmem>>, vector<1x8x32xbf16>,
    return
  }
  func.func @transform_0(%arg0: i32, %arg1: i32) -> (i32, i32, i32, i32, i32) {
    %c0_i32 = arith.constant 0 : i32
    %c0_i32_0 = arith.constant 0 : i32
    %c0_i32_1 = arith.constant 0 : i32
    %c0_i32_2 = arith.constant 0 : i32
    return %arg0, %c0_i32, %c0_i32_0, %arg1, %c0_i32_1 : i32, i32, i32, i32, i32
  }
  func.func @transform_1(%arg0: i32, %arg1: i32) -> (i32, i32, i32) {
    %c0_i32 = arith.constant 0 : i32
    %c0_i32_0 = arith.constant 0 : i32
    return %arg0, %c0_i32, %arg1 : i32, i32, i32
  }
}

module attributes {stable_mosaic.version = 11 : i64} {
  func.func @_matmul_ln_res_kernel(%arg0: i32, %arg1: memref<16x32xbf16, #tpu.memory_space<vmem>>, %arg2: memref<32x32xbf16, #tpu.memory_space<vmem>>, %arg3: memref<1x32xf32, #tpu.memory_space<vmem>>, %arg4: memref<16x32xf32, #tpu.memory_space<vmem>>, %arg5: memref<1x32xf32, #tpu.memory_space<vmem>>, %arg6: memref<1x32xf32, #tpu.memory_space<vmem>>, %arg7: memref<16x32xf32, #tpu.memory_space<vmem>>) attributes {dimension_semantics = [#tpu.dimension_semantics<parallel>], iteration_bounds = array<i64: 1>, scalar_prefetch = 0 : i64, scratch_operands = 0 : i64, tpu.core_type = #tpu.core_type<tc>, window_params = [{transform_indices = @transform_0, window_bounds = array<i64: 16, 32>}, {pipeline_mode = #tpu.pipeline_mode<synchronous>, transform_indices = @transform_1, window_bounds = array<i64: 32, 32>}, {pipeline_mode = #tpu.pipeline_mode<synchronous>, transform_indices = @transform_2, window_bounds = array<i64: 1, 32>}, {transform_indices = @transform_3, window_bounds = array<i64: 16, 32>}, {pipeline_mode = #tpu.pipeline_mode<synchronous>, transform_indices = @transform_4, window_bounds = array<i64: 1, 32>}, {pipeline_mode = #tpu.pipeline_mode<synchronous>, transform_indices = @transform_5, window_bounds = array<i64: 1, 32>}, {transform_indices = @transform_6, window_bounds = array<i64: 16, 32>}]} {
    %c0 = arith.constant 0 : index
    %c0_0 = arith.constant 0 : index
    %0 = vector.load %arg1[%c0, %c0_0] : memref<16x32xbf16, #tpu.memory_space<vmem>>, vector<16x32xbf16>
    %c0_1 = arith.constant 0 : index
    %c0_2 = arith.constant 0 : index
    %1 = vector.load %arg2[%c0_1, %c0_2] : memref<32x32xbf16, #tpu.memory_space<vmem>>, vector<32x32xbf16>
    %cst = arith.constant dense<0.000000e+00> : vector<16x32xf32>
    %2 = tpu.matmul %0, %1, %cst {dimension_numbers = #tpu.dot_dimension_numbers<[1], [0], [0], [1], [0, 0, 1, 1], [], []>} : vector<16x32xbf16>, vector<32x32xbf16>, vector<16x32xf32> -> vector<16x32xf32>
    %c0_3 = arith.constant 0 : index
    %c0_4 = arith.constant 0 : index
    %3 = vector.load %arg3[%c0_3, %c0_4] : memref<1x32xf32, #tpu.memory_space<vmem>>, vector<1x32xf32>
    %4 = vector.broadcast %3 : vector<1x32xf32> to vector<16x32xf32>
    %5 = arith.addf %2, %4 : vector<16x32xf32>
    %cst_5 = arith.constant dense<0.000000e+00> : vector<16xf32>
    %6 = vector.multi_reduction <add>, %5, %cst_5 [1] : vector<16x32xf32> to vector<16xf32>
    %7 = vector.shape_cast %6 : vector<16xf32> to vector<16x1xf32>
    %cst_6 = arith.constant 3.200000e+01 : f32
    %8 = vector.broadcast %cst_6 : f32 to vector<16x1xf32>
    %9 = arith.divf %7, %8 : vector<16x1xf32>
    %10 = vector.broadcast %9 : vector<16x1xf32> to vector<16x32xf32>
    %11 = arith.subf %5, %10 : vector<16x32xf32>
    %12 = arith.mulf %11, %11 : vector<16x32xf32>
    %cst_7 = arith.constant dense<0.000000e+00> : vector<16xf32>
    %13 = vector.multi_reduction <add>, %12, %cst_7 [1] : vector<16x32xf32> to vector<16xf32>
    %14 = vector.shape_cast %13 : vector<16xf32> to vector<16x1xf32>
    %cst_8 = arith.constant 3.200000e+01 : f32
    %15 = vector.broadcast %cst_8 : f32 to vector<16x1xf32>
    %16 = arith.divf %14, %15 : vector<16x1xf32>
    %17 = vector.broadcast %9 : vector<16x1xf32> to vector<16x32xf32>
    %18 = arith.subf %5, %17 : vector<16x32xf32>
    %cst_9 = arith.constant 9.99999974E-6 : f32
    %19 = vector.broadcast %cst_9 : f32 to vector<16x1xf32>
    %20 = arith.addf %16, %19 : vector<16x1xf32>
    %21 = math.rsqrt %20 : vector<16x1xf32>
    %22 = vector.broadcast %21 : vector<16x1xf32> to vector<16x32xf32>
    %23 = arith.mulf %18, %22 : vector<16x32xf32>
    %c0_10 = arith.constant 0 : index
    %c0_11 = arith.constant 0 : index
    %24 = vector.load %arg4[%c0_10, %c0_11] : memref<16x32xf32, #tpu.memory_space<vmem>>, vector<16x32xf32>
    %c0_12 = arith.constant 0 : index
    %c0_13 = arith.constant 0 : index
    %25 = vector.load %arg5[%c0_12, %c0_13] : memref<1x32xf32, #tpu.memory_space<vmem>>, vector<1x32xf32>
    %26 = vector.broadcast %25 : vector<1x32xf32> to vector<16x32xf32>
    %27 = arith.mulf %23, %26 : vector<16x32xf32>
    %28 = arith.addf %24, %27 : vector<16x32xf32>
    %c0_14 = arith.constant 0 : index
    %c0_15 = arith.constant 0 : index
    %29 = vector.load %arg6[%c0_14, %c0_15] : memref<1x32xf32, #tpu.memory_space<vmem>>, vector<1x32xf32>
    %30 = vector.broadcast %29 : vector<1x32xf32> to vector<16x32xf32>
    %31 = arith.addf %28, %30 : vector<16x32xf32>
    %c0_16 = arith.constant 0 : index
    %c0_17 = arith.constant 0 : index
    %32 = vector.load %arg7[%c0_16, %c0_17] : memref<16x32xf32, #tpu.memory_space<vmem>>, vector<16x32xf32>
    tpu.vector_store %arg7[%c0_16, %c0_17], %31 {strides = array<i32>} : memref<16x32xf32, #tpu.memory_space<vmem>>, vector<16x32xf32>,
    return
  }
  func.func @transform_0(%arg0: i32) -> (i32, i32) {
    %c0_i32 = arith.constant 0 : i32
    %c0_i32_0 = arith.constant 0 : i32
    return %arg0, %c0_i32 : i32, i32
  }
  func.func @transform_1(%arg0: i32) -> (i32, i32) {
    %c0_i32 = arith.constant 0 : i32
    %c0_i32_0 = arith.constant 0 : i32
    %c0_i32_1 = arith.constant 0 : i32
    return %c0_i32, %c0_i32_0 : i32, i32
  }
  func.func @transform_2(%arg0: i32) -> (i32, i32) {
    %c0_i32 = arith.constant 0 : i32
    %c0_i32_0 = arith.constant 0 : i32
    %c0_i32_1 = arith.constant 0 : i32
    return %c0_i32, %c0_i32_0 : i32, i32
  }
  func.func @transform_3(%arg0: i32) -> (i32, i32) {
    %c0_i32 = arith.constant 0 : i32
    %c0_i32_0 = arith.constant 0 : i32
    return %arg0, %c0_i32 : i32, i32
  }
  func.func @transform_4(%arg0: i32) -> (i32, i32) {
    %c0_i32 = arith.constant 0 : i32
    %c0_i32_0 = arith.constant 0 : i32
    %c0_i32_1 = arith.constant 0 : i32
    return %c0_i32, %c0_i32_0 : i32, i32
  }
  func.func @transform_5(%arg0: i32) -> (i32, i32) {
    %c0_i32 = arith.constant 0 : i32
    %c0_i32_0 = arith.constant 0 : i32
    %c0_i32_1 = arith.constant 0 : i32
    return %c0_i32, %c0_i32_0 : i32, i32
  }
  func.func @transform_6(%arg0: i32) -> (i32, i32) {
    %c0_i32 = arith.constant 0 : i32
    %c0_i32_0 = arith.constant 0 : i32
    return %arg0, %c0_i32 : i32, i32
  }
}

module attributes {stable_mosaic.version = 11 : i64} {
  func.func @_matmul_bias_kernel(%arg0: i32, %arg1: i32, %arg2: i32, %arg3: memref<16x32xf32, #tpu.memory_space<vmem>>, %arg4: memref<32x96xbf16, #tpu.memory_space<vmem>>, %arg5: memref<1x96xf32, #tpu.memory_space<vmem>>, %arg6: memref<16x96xbf16, #tpu.memory_space<vmem>>, %arg7: memref<16x96xf32, #tpu.memory_space<vmem>>) attributes {dimension_semantics = [#tpu.dimension_semantics<parallel>, #tpu.dimension_semantics<parallel>, #tpu.dimension_semantics<arbitrary>], iteration_bounds = array<i64: 1, 1, 1>, scalar_prefetch = 0 : i64, scratch_operands = 1 : i64, tpu.core_type = #tpu.core_type<tc>, window_params = [{transform_indices = @transform_0, window_bounds = array<i64: 16, 32>}, {transform_indices = @transform_1, window_bounds = array<i64: 32, 96>}, {transform_indices = @transform_2, window_bounds = array<i64: 1, 96>}, {transform_indices = @transform_3, window_bounds = array<i64: 16, 96>}]} {
    %c0_i32 = arith.constant 0 : i32
    %0 = arith.cmpi eq, %arg2, %c0_i32 : i32
    %1 = arith.extui %0 : i1 to i32
    %c0_i32_0 = arith.constant 0 : i32
    %2 = arith.cmpi ne, %1, %c0_i32_0 : i32
    scf.if %2 {
      %cst_10 = arith.constant 0.000000e+00 : f32
      %13 = vector.broadcast %cst_10 : f32 to vector<16x96xf32>
      %c0_11 = arith.constant 0 : index
      %c0_12 = arith.constant 0 : index
      %14 = vector.load %arg7[%c0_11, %c0_12] : memref<16x96xf32, #tpu.memory_space<vmem>>, vector<16x96xf32>
      tpu.vector_store %arg7[%c0_11, %c0_12], %13 {strides = array<i32>} : memref<16x96xf32, #tpu.memory_space<vmem>>, vector<16x96xf32>,
    } else {
    }
    %c0 = arith.constant 0 : index
    %c0_1 = arith.constant 0 : index
    %3 = vector.load %arg7[%c0, %c0_1] : memref<16x96xf32, #tpu.memory_space<vmem>>, vector<16x96xf32>
    %c0_2 = arith.constant 0 : index
    %c0_3 = arith.constant 0 : index
    %4 = vector.load %arg3[%c0_2, %c0_3] : memref<16x32xf32, #tpu.memory_space<vmem>>, vector<16x32xf32>
    %5 = arith.truncf %4 : vector<16x32xf32> to vector<16x32xbf16>
    %c0_4 = arith.constant 0 : index
    %c0_5 = arith.constant 0 : index
    %6 = vector.load %arg4[%c0_4, %c0_5] : memref<32x96xbf16, #tpu.memory_space<vmem>>, vector<32x96xbf16>
    %cst = arith.constant dense<0.000000e+00> : vector<16x96xf32>
    %7 = tpu.matmul %5, %6, %cst {dimension_numbers = #tpu.dot_dimension_numbers<[1], [0], [0], [1], [0, 0, 1, 1], [], []>} : vector<16x32xbf16>, vector<32x96xbf16>, vector<16x96xf32> -> vector<16x96xf32>
    %8 = arith.addf %3, %7 : vector<16x96xf32>
    %c0_6 = arith.constant 0 : index
    %c0_7 = arith.constant 0 : index
    %9 = vector.load %arg7[%c0_6, %c0_7] : memref<16x96xf32, #tpu.memory_space<vmem>>, vector<16x96xf32>
    tpu.vector_store %arg7[%c0_6, %c0_7], %8 {strides = array<i32>} : memref<16x96xf32, #tpu.memory_space<vmem>>, vector<16x96xf32>,
    %c0_i32_8 = arith.constant 0 : i32
    %10 = arith.cmpi eq, %arg2, %c0_i32_8 : i32
    %11 = arith.extui %10 : i1 to i32
    %c0_i32_9 = arith.constant 0 : i32
    %12 = arith.cmpi ne, %11, %c0_i32_9 : i32
    scf.if %12 {
      %c0_10 = arith.constant 0 : index
      %c0_11 = arith.constant 0 : index
      %13 = vector.load %arg7[%c0_10, %c0_11] : memref<16x96xf32, #tpu.memory_space<vmem>>, vector<16x96xf32>
      %c0_12 = arith.constant 0 : index
      %c0_13 = arith.constant 0 : index
      %14 = vector.load %arg5[%c0_12, %c0_13] : memref<1x96xf32, #tpu.memory_space<vmem>>, vector<1x96xf32>
      %15 = vector.broadcast %14 : vector<1x96xf32> to vector<16x96xf32>
      %16 = arith.addf %13, %15 : vector<16x96xf32>
      %17 = arith.truncf %16 : vector<16x96xf32> to vector<16x96xbf16>
      %c0_14 = arith.constant 0 : index
      %c0_15 = arith.constant 0 : index
      %18 = vector.load %arg6[%c0_14, %c0_15] : memref<16x96xbf16, #tpu.memory_space<vmem>>, vector<16x96xbf16>
      tpu.vector_store %arg6[%c0_14, %c0_15], %17 {strides = array<i32>} : memref<16x96xbf16, #tpu.memory_space<vmem>>, vector<16x96xbf16>,
    } else {
    }
    return
  }
  func.func @transform_0(%arg0: i32, %arg1: i32, %arg2: i32) -> (i32, i32) {
    %c0_i32 = arith.constant 0 : i32
    return %arg0, %arg2 : i32, i32
  }
  func.func @transform_1(%arg0: i32, %arg1: i32, %arg2: i32) -> (i32, i32) {
    %c0_i32 = arith.constant 0 : i32
    return %arg2, %arg1 : i32, i32
  }
  func.func @transform_2(%arg0: i32, %arg1: i32, %arg2: i32) -> (i32, i32) {
    %c0_i32 = arith.constant 0 : i32
    %c0_i32_0 = arith.constant 0 : i32
    return %c0_i32, %arg1 : i32, i32
  }
  func.func @transform_3(%arg0: i32, %arg1: i32, %arg2: i32) -> (i32, i32) {
    %c0_i32 = arith.constant 0 : i32
    return %arg0, %arg1 : i32, i32
  }
}

module attributes {stable_mosaic.version = 11 : i64} {
  func.func @_mlp_ln_res_kernel(%arg0: i32, %arg1: i32, %arg2: memref<16x32xf32, #tpu.memory_space<vmem>>, %arg3: memref<32x128xbf16, #tpu.memory_space<vmem>>, %arg4: memref<1x128xf32, #tpu.memory_space<vmem>>, %arg5: memref<128x32xbf16, #tpu.memory_space<vmem>>, %arg6: memref<1x32xf32, #tpu.memory_space<vmem>>, %arg7: memref<1x32xf32, #tpu.memory_space<vmem>>, %arg8: memref<1x32xf32, #tpu.memory_space<vmem>>, %arg9: memref<16x32xf32, #tpu.memory_space<vmem>>, %arg10: memref<16x32xf32, #tpu.memory_space<vmem>>) attributes {dimension_semantics = [#tpu.dimension_semantics<parallel>, #tpu.dimension_semantics<arbitrary>], iteration_bounds = array<i64: 1, 1>, scalar_prefetch = 0 : i64, scratch_operands = 1 : i64, tpu.core_type = #tpu.core_type<tc>, window_params = [{transform_indices = @transform_0, window_bounds = array<i64: 16, 32>}, {transform_indices = @transform_1, window_bounds = array<i64: 32, 128>}, {transform_indices = @transform_2, window_bounds = array<i64: 1, 128>}, {transform_indices = @transform_3, window_bounds = array<i64: 128, 32>}, {pipeline_mode = #tpu.pipeline_mode<synchronous>, transform_indices = @transform_4, window_bounds = array<i64: 1, 32>}, {pipeline_mode = #tpu.pipeline_mode<synchronous>, transform_indices = @transform_5, window_bounds = array<i64: 1, 32>}, {pipeline_mode = #tpu.pipeline_mode<synchronous>, transform_indices = @transform_6, window_bounds = array<i64: 1, 32>}, {transform_indices = @transform_7, window_bounds = array<i64: 16, 32>}]} {
    %c0_i32 = arith.constant 0 : i32
    %0 = arith.cmpi eq, %arg1, %c0_i32 : i32
    %1 = arith.extui %0 : i1 to i32
    %c0_i32_0 = arith.constant 0 : i32
    %2 = arith.cmpi ne, %1, %c0_i32_0 : i32
    scf.if %2 {
      %cst_17 = arith.constant 0.000000e+00 : f32
      %27 = vector.broadcast %cst_17 : f32 to vector<16x32xf32>
      %c0_18 = arith.constant 0 : index
      %c0_19 = arith.constant 0 : index
      %28 = vector.load %arg10[%c0_18, %c0_19] : memref<16x32xf32, #tpu.memory_space<vmem>>, vector<16x32xf32>
      tpu.vector_store %arg10[%c0_18, %c0_19], %27 {strides = array<i32>} : memref<16x32xf32, #tpu.memory_space<vmem>>, vector<16x32xf32>,
    } else {
    }
    %c0 = arith.constant 0 : index
    %c0_1 = arith.constant 0 : index
    %3 = vector.load %arg2[%c0, %c0_1] : memref<16x32xf32, #tpu.memory_space<vmem>>, vector<16x32xf32>
    %4 = arith.truncf %3 : vector<16x32xf32> to vector<16x32xbf16>
    %c0_2 = arith.constant 0 : index
    %c0_3 = arith.constant 0 : index
    %5 = vector.load %arg3[%c0_2, %c0_3] : memref<32x128xbf16, #tpu.memory_space<vmem>>, vector<32x128xbf16>
    %cst = arith.constant dense<0.000000e+00> : vector<16x128xf32>
    %6 = tpu.matmul %4, %5, %cst {dimension_numbers = #tpu.dot_dimension_numbers<[1], [0], [0], [1], [0, 0, 1, 1], [], []>} : vector<16x32xbf16>, vector<32x128xbf16>, vector<16x128xf32> -> vector<16x128xf32>
    %c0_4 = arith.constant 0 : index
    %c0_5 = arith.constant 0 : index
    %7 = vector.load %arg4[%c0_4, %c0_5] : memref<1x128xf32, #tpu.memory_space<vmem>>, vector<1x128xf32>
    %8 = vector.broadcast %7 : vector<1x128xf32> to vector<16x128xf32>
    %9 = arith.addf %6, %8 : vector<16x128xf32>
    %cst_6 = arith.constant 1.702000e+00 : f32
    %10 = vector.broadcast %cst_6 : f32 to vector<16x128xf32>
    %11 = arith.mulf %10, %9 : vector<16x128xf32>
    %12 = arith.negf %11 : vector<16x128xf32>
    %13 = math.exp %12 : vector<16x128xf32>
    %cst_7 = arith.constant 1.000000e+00 : f32
    %14 = vector.broadcast %cst_7 : f32 to vector<16x128xf32>
    %15 = arith.addf %14, %13 : vector<16x128xf32>
    %16 = arith.divf %14, %15 : vector<16x128xf32>
    %17 = arith.mulf %9, %16 : vector<16x128xf32>
    %c0_8 = arith.constant 0 : index
    %c0_9 = arith.constant 0 : index
    %18 = vector.load %arg10[%c0_8, %c0_9] : memref<16x32xf32, #tpu.memory_space<vmem>>, vector<16x32xf32>
    %19 = arith.truncf %17 : vector<16x128xf32> to vector<16x128xbf16>
    %c0_10 = arith.constant 0 : index
    %c0_11 = arith.constant 0 : index
    %20 = vector.load %arg5[%c0_10, %c0_11] : memref<128x32xbf16, #tpu.memory_space<vmem>>, vector<128x32xbf16>
    %cst_12 = arith.constant dense<0.000000e+00> : vector<16x32xf32>
    %21 = tpu.matmul %19, %20, %cst_12 {dimension_numbers = #tpu.dot_dimension_numbers<[1], [0], [0], [1], [0, 0, 1, 1], [], []>} : vector<16x128xbf16>, vector<128x32xbf16>, vector<16x32xf32> -> vector<16x32xf32>
    %22 = arith.addf %18, %21 : vector<16x32xf32>
    %c0_13 = arith.constant 0 : index
    %c0_14 = arith.constant 0 : index
    %23 = vector.load %arg10[%c0_13, %c0_14] : memref<16x32xf32, #tpu.memory_space<vmem>>, vector<16x32xf32>
    tpu.vector_store %arg10[%c0_13, %c0_14], %22 {strides = array<i32>} : memref<16x32xf32, #tpu.memory_space<vmem>>, vector<16x32xf32>,
    %c0_i32_15 = arith.constant 0 : i32
    %24 = arith.cmpi eq, %arg1, %c0_i32_15 : i32
    %25 = arith.extui %24 : i1 to i32
    %c0_i32_16 = arith.constant 0 : i32
    %26 = arith.cmpi ne, %25, %c0_i32_16 : i32
    scf.if %26 {
      %c0_17 = arith.constant 0 : index
      %c0_18 = arith.constant 0 : index
      %27 = vector.load %arg10[%c0_17, %c0_18] : memref<16x32xf32, #tpu.memory_space<vmem>>, vector<16x32xf32>
      %c0_19 = arith.constant 0 : index
      %c0_20 = arith.constant 0 : index
      %28 = vector.load %arg6[%c0_19, %c0_20] : memref<1x32xf32, #tpu.memory_space<vmem>>, vector<1x32xf32>
      %29 = vector.broadcast %28 : vector<1x32xf32> to vector<16x32xf32>
      %30 = arith.addf %27, %29 : vector<16x32xf32>
      %cst_21 = arith.constant dense<0.000000e+00> : vector<16xf32>
      %31 = vector.multi_reduction <add>, %30, %cst_21 [1] : vector<16x32xf32> to vector<16xf32>
      %32 = vector.shape_cast %31 : vector<16xf32> to vector<16x1xf32>
      %cst_22 = arith.constant 3.200000e+01 : f32
      %33 = vector.broadcast %cst_22 : f32 to vector<16x1xf32>
      %34 = arith.divf %32, %33 : vector<16x1xf32>
      %35 = vector.broadcast %34 : vector<16x1xf32> to vector<16x32xf32>
      %36 = arith.subf %30, %35 : vector<16x32xf32>
      %37 = arith.mulf %36, %36 : vector<16x32xf32>
      %cst_23 = arith.constant dense<0.000000e+00> : vector<16xf32>
      %38 = vector.multi_reduction <add>, %37, %cst_23 [1] : vector<16x32xf32> to vector<16xf32>
      %39 = vector.shape_cast %38 : vector<16xf32> to vector<16x1xf32>
      %cst_24 = arith.constant 3.200000e+01 : f32
      %40 = vector.broadcast %cst_24 : f32 to vector<16x1xf32>
      %41 = arith.divf %39, %40 : vector<16x1xf32>
      %42 = vector.broadcast %34 : vector<16x1xf32> to vector<16x32xf32>
      %43 = arith.subf %30, %42 : vector<16x32xf32>
      %cst_25 = arith.constant 9.99999974E-6 : f32
      %44 = vector.broadcast %cst_25 : f32 to vector<16x1xf32>
      %45 = arith.addf %41, %44 : vector<16x1xf32>
      %46 = math.rsqrt %45 : vector<16x1xf32>
      %47 = vector.broadcast %46 : vector<16x1xf32> to vector<16x32xf32>
      %48 = arith.mulf %43, %47 : vector<16x32xf32>
      %c0_26 = arith.constant 0 : index
      %c0_27 = arith.constant 0 : index
      %49 = vector.load %arg2[%c0_26, %c0_27] : memref<16x32xf32, #tpu.memory_space<vmem>>, vector<16x32xf32>
      %c0_28 = arith.constant 0 : index
      %c0_29 = arith.constant 0 : index
      %50 = vector.load %arg7[%c0_28, %c0_29] : memref<1x32xf32, #tpu.memory_space<vmem>>, vector<1x32xf32>
      %51 = vector.broadcast %50 : vector<1x32xf32> to vector<16x32xf32>
      %52 = arith.mulf %48, %51 : vector<16x32xf32>
      %53 = arith.addf %49, %52 : vector<16x32xf32>
      %c0_30 = arith.constant 0 : index
      %c0_31 = arith.constant 0 : index
      %54 = vector.load %arg8[%c0_30, %c0_31] : memref<1x32xf32, #tpu.memory_space<vmem>>, vector<1x32xf32>
      %55 = vector.broadcast %54 : vector<1x32xf32> to vector<16x32xf32>
      %56 = arith.addf %53, %55 : vector<16x32xf32>
      %c0_32 = arith.constant 0 : index
      %c0_33 = arith.constant 0 : index
      %57 = vector.load %arg9[%c0_32, %c0_33] : memref<16x32xf32, #tpu.memory_space<vmem>>, vector<16x32xf32>
      tpu.vector_store %arg9[%c0_32, %c0_33], %56 {strides = array<i32>} : memref<16x32xf32, #tpu.memory_space<vmem>>, vector<16x32xf32>,
    } else {
    }
    return
  }
  func.func @transform_0(%arg0: i32, %arg1: i32) -> (i32, i32) {
    %c0_i32 = arith.constant 0 : i32
    %c0_i32_0 = arith.constant 0 : i32
    return %arg0, %c0_i32 : i32, i32
  }
  func.func @transform_1(%arg0: i32, %arg1: i32) -> (i32, i32) {
    %c0_i32 = arith.constant 0 : i32
    %c0_i32_0 = arith.constant 0 : i32
    return %c0_i32, %arg1 : i32, i32
  }
  func.func @transform_2(%arg0: i32, %arg1: i32) -> (i32, i32) {
    %c0_i32 = arith.constant 0 : i32
    %c0_i32_0 = arith.constant 0 : i32
    return %c0_i32, %arg1 : i32, i32
  }
  func.func @transform_3(%arg0: i32, %arg1: i32) -> (i32, i32) {
    %c0_i32 = arith.constant 0 : i32
    %c0_i32_0 = arith.constant 0 : i32
    return %arg1, %c0_i32 : i32, i32
  }
  func.func @transform_4(%arg0: i32, %arg1: i32) -> (i32, i32) {
    %c0_i32 = arith.constant 0 : i32
    %c0_i32_0 = arith.constant 0 : i32
    %c0_i32_1 = arith.constant 0 : i32
    return %c0_i32, %c0_i32_0 : i32, i32
  }
  func.func @transform_5(%arg0: i32, %arg1: i32) -> (i32, i32) {
    %c0_i32 = arith.constant 0 : i32
    %c0_i32_0 = arith.constant 0 : i32
    %c0_i32_1 = arith.constant 0 : i32
    return %c0_i32, %c0_i32_0 : i32, i32
  }
  func.func @transform_6(%arg0: i32, %arg1: i32) -> (i32, i32) {
    %c0_i32 = arith.constant 0 : i32
    %c0_i32_0 = arith.constant 0 : i32
    %c0_i32_1 = arith.constant 0 : i32
    return %c0_i32, %c0_i32_0 : i32, i32
  }
  func.func @transform_7(%arg0: i32, %arg1: i32) -> (i32, i32) {
    %c0_i32 = arith.constant 0 : i32
    %c0_i32_0 = arith.constant 0 : i32
    return %arg0, %c0_i32 : i32, i32
  }
}

</mosaic_0001>

<bundles_post_ra>
// kernel: step3_vision_encoder.10
= control target key start
LH: loop header
LB: loop body
LE: loop exit
PB: predicated region body
PF: predicated region fallthrough
CT: control target
= control target key end

     0   :  { %11 = vsyncpa [#allocation3], 0  ;;  %s607_s0 = inlined_call_operand.hbm [shape: bf16[16,32], index: 0, kind: input, shape index: {}]   ;;  %s608_s1 = inlined_call_operand.hbm [shape: bf16[32,32], index: 1, kind: input, shape index: {}]   ;;  %s609_s2 = inlined_call_operand.hbm [shape: f32[1,32], index: 2, kind: input, shape index: {}]   ;;  %s610_s3 = inlined_call_operand.hbm [shape: f32[16,32], index: 3, kind: input, shape index: {}]   ;;  %s611_s4 = inlined_call_operand.hbm [shape: f32[1,32], index: 4, kind: input, shape index: {}]   ;;  %s612_s5 = inlined_call_operand.hbm [shape: f32[1,32], index: 5, kind: input, shape index: {}]   ;;  %s613_s6 = inlined_call_operand.hbm [shape: f32[16,32], index: 6, kind: output, shape index: {}]  }
   0x1   :  { %12 = vsyncpa [#allocation6], 0 }
   0x2   :  { %13 = vsyncpa [#allocation9], 0 }
   0x3   :  { %14 = vsyncpa [#allocation12], 0 }
   0x4   :  { %15 = vsyncpa [#allocation4], 0  ;;  %s449_s21 = smov [#allocation5]   ;;  %s450_s23 = smov [#allocation8]  }
   0x5   :  { %s33_s22 = sshll.u32 %s449_s21, 4  ;;  %s55_s24 = sshll.u32 %s450_s23, 4  ;;  %s34_s22 = int_to_ptr.vmem [resolvable:$true] %s33_s22  ;;  %s497_s24 = int_to_ptr.vmem [resolvable:$true] %s55_s24 }
   0x6   :  { %s285_s27 = scalar_lea.hbm %s608_s1, 256 }
   0x7   :  { %p286_p0 = scmp.ne.s32.totalorder %s608_s1, %s285_s27  ;;  %p289_p1 = scmp.lt.u32.totalorder %s285_s27, %s608_s1 }
   0x9   :  { %p291_p2 = pnand %p289_p1, %p286_p0 }
   0xb   :  { %294 = shalt.err (!%p291_p2)
}
   0xc   :  { %s295_s8 = scalar_lea.vmem %s34_s22, 256  ;;  %p300_p4 = scmp.lt.s32.totalorder %s34_s22, %s34_s22 }
   0xd   :  { %p296_p3 = scmp.ne.s32.totalorder %s34_s22, %s295_s8  ;;  %p301_p5 = scmp.lt.s32.totalorder %s295_s8, %s295_s8 }
   0xf   :  { %p302_p6 = por %p301_p5, %p300_p4 }
  0x11   :  { %p303_p7 = pnand %p302_p6, %p296_p3 }
  0x13   :  { %306 = shalt.err (!%p303_p7)
}
  0x14   :  { %s451_s9 = smov 64   ;;  %s452_s10 = smov 4  }
  0x15   :  { %39 = dma.hbm_to_vmem [thread:$0]  %s608_s1, 256, %s34_s22, [#allocation6], %s451_s9, %s451_s9, %s452_s10  }
  0x16   :  { %s307_s15 = scalar_lea.hbm %s610_s3, 256 }
  0x17   :  { %p308_p8 = scmp.ne.s32.totalorder %s610_s3, %s307_s15  ;;  %p311_p9 = scmp.lt.u32.totalorder %s307_s15, %s610_s3 }
  0x19   :  { %p313_p10 = pnand %p311_p9, %p308_p8 }
  0x1b   :  { %316 = shalt.err (!%p313_p10)
}
  0x1c   :  { %s317_s20 = scalar_lea.vmem %s497_s24, 256  ;;  %p322_p12 = scmp.lt.s32.totalorder %s497_s24, %s497_s24 }
  0x1d   :  { %p318_p11 = scmp.ne.s32.totalorder %s497_s24, %s317_s20  ;;  %p323_p13 = scmp.lt.s32.totalorder %s317_s20, %s317_s20 }
  0x1f   :  { %p324_p0 = por %p323_p13, %p322_p12 }
  0x21   :  { %p325_p1 = pnand %p324_p0, %p318_p11 }
  0x23   :  { %328 = shalt.err (!%p325_p1)
}
  0x24   :  { %s453_s1 = smov 128   ;;  %s454_s21 = smov 8  }
  0x25   :  { %61 = dma.hbm_to_vmem [thread:$0]  %s610_s3, 256, %s497_s24, [#allocation9], %s453_s1, %s453_s1, %s454_s21  }
  0x26   :  { %s455_s25 = smov [#allocation2]   ;;  %s456_s27 = smov [#allocation7]  }
  0x27   :  { %s21_s26 = sshll.u32 %s455_s25, 4  ;;  %s46_s28 = sshll.u32 %s456_s27, 4  ;;  %s22_s26 = int_to_ptr.vmem [resolvable:$true] %s21_s26  ;;  %s47_s28 = int_to_ptr.vmem [resolvable:$true] %s46_s28 }
  0x28   :  { %s329_s7 = scalar_lea.hbm %s607_s0, 128 }
  0x29   :  { %p330_p2 = scmp.ne.s32.totalorder %s607_s0, %s329_s7  ;;  %p333_p3 = scmp.lt.u32.totalorder %s329_s7, %s607_s0 }
  0x2b   :  { %p335_p4 = pnand %p333_p3, %p330_p2 }
  0x2d   :  { %338 = shalt.err (!%p335_p4)
}
  0x2e   :  { %s339_s3 = scalar_lea.vmem %s22_s26, 128  ;;  %p344_p6 = scmp.lt.s32.totalorder %s22_s26, %s22_s26 }
  0x2f   :  { %p340_p5 = scmp.ne.s32.totalorder %s22_s26, %s339_s3  ;;  %p345_p7 = scmp.lt.s32.totalorder %s339_s3, %s339_s3 }
  0x31   :  { %p346_p8 = por %p345_p7, %p344_p6 }
  0x33   :  { %p347_p9 = pnand %p346_p8, %p340_p5 }
  0x35   :  { %350 = shalt.err (!%p347_p9)
}
  0x36   :  { %27 = dma.hbm_to_vmem [thread:$0]  %s607_s0, 128, %s22_s26, [#allocation3], %s451_s9, %s451_s9, %s452_s10  }
  0x37   :  { %s351_s17 = scalar_lea.hbm %s609_s2, 16 }
  0x38   :  { %p352_p10 = scmp.ne.s32.totalorder %s609_s2, %s351_s17  ;;  %p355_p11 = scmp.lt.u32.totalorder %s351_s17, %s609_s2 }
  0x3a   :  { %p357_p12 = pnand %p355_p11, %p352_p10 }
  0x3c   :  { %360 = shalt.err (!%p357_p12)
}
  0x3d   :  { %s361_s23 = scalar_lea.vmem %s47_s28, 16  ;;  %s365_s25 = scalar_lea.vmem %s47_s28, 32 }
  0x3e   :  { %p362_p13 = scmp.ne.s32.totalorder %s47_s28, %s361_s23  ;;  %p366_p0 = scmp.lt.s32.totalorder %s47_s28, %s47_s28 }
  0x3f   :  { %p367_p1 = scmp.lt.s32.totalorder %s365_s25, %s361_s23 }
  0x41   :  { %p368_p2 = por %p367_p1, %p366_p0 }
  0x43   :  { %p369_p3 = pnand %p368_p2, %p362_p13 }
  0x45   :  { %372 = shalt.err (!%p369_p3)
}
  0x46   :  { %49 = dma.hbm_to_vmem [thread:$0]  %s609_s2, 16, %s47_s28, [#allocation6]  }
  0x47   :  { %s457_s10 = smov [#allocation10]   ;;  %s458_s27 = smov [#allocation11]  }
  0x48   :  { %s68_s26 = sshll.u32 %s457_s10, 4  ;;  %s78_s29 = sshll.u32 %s458_s27, 4  ;;  %s69_s26 = int_to_ptr.vmem [resolvable:$true] %s68_s26  ;;  %s79_s29 = int_to_ptr.vmem [resolvable:$true] %s78_s29 }
  0x49   :  { %s373_s8 = scalar_lea.hbm %s611_s4, 16 }
  0x4a   :  { %p374_p4 = scmp.ne.s32.totalorder %s611_s4, %s373_s8  ;;  %p377_p5 = scmp.lt.u32.totalorder %s373_s8, %s611_s4 }
  0x4c   :  { %p379_p6 = pnand %p377_p5, %p374_p4 }
  0x4e   :  { %382 = shalt.err (!%p379_p6)
}
  0x4f   :  { %s383_s2 = scalar_lea.vmem %s69_s26, 16  ;;  %s387_s28 = scalar_lea.vmem %s69_s26, 32 }
  0x50   :  { %p384_p7 = scmp.ne.s32.totalorder %s69_s26, %s383_s2  ;;  %p388_p8 = scmp.lt.s32.totalorder %s69_s26, %s69_s26 }
  0x51   :  { %p389_p9 = scmp.lt.s32.totalorder %s387_s28, %s383_s2 }
  0x53   :  { %p390_p10 = por %p389_p9, %p388_p8 }
  0x55   :  { %p391_p11 = pnand %p390_p10, %p384_p7 }
  0x57   :  { %394 = shalt.err (!%p391_p11)
}
  0x58   :  { %71 = dma.hbm_to_vmem [thread:$0]  %s611_s4, 16, %s69_s26, [#allocation9]  }
  0x59   :  { %s395_s17 = scalar_lea.hbm %s612_s5, 16 }
  0x5a   :  { %p396_p12 = scmp.ne.s32.totalorder %s612_s5, %s395_s17  ;;  %p399_p13 = scmp.lt.u32.totalorder %s395_s17, %s612_s5 }
  0x5c   :  { %p401_p0 = pnand %p399_p13, %p396_p12 }
  0x5e   :  { %404 = shalt.err (!%p401_p0)
}
  0x5f   :  { %s405_s23 = scalar_lea.vmem %s79_s29, 16  ;;  %s409_s25 = scalar_lea.vmem %s79_s29, 32 }
  0x60   :  { %p406_p1 = scmp.ne.s32.totalorder %s79_s29, %s405_s23  ;;  %p410_p2 = scmp.lt.s32.totalorder %s79_s29, %s79_s29 }
  0x61   :  { %p411_p3 = scmp.lt.s32.totalorder %s409_s25, %s405_s23 }
  0x63   :  { %p412_p4 = por %p411_p3, %p410_p2 }
  0x65   :  { %p413_p5 = pnand %p412_p4, %p406_p1 }
  0x67   :  { %416 = shalt.err (!%p413_p5)
}
  0x68   :  { %81 = dma.hbm_to_vmem [thread:$0]  %s612_s5, 16, %s79_s29, [#allocation12]  }
  0x69   :  { %439 = dma.done.wait [#allocation3], 128  }
  0x6a   :  { %440 = vsyncadd [#allocation3], 4294967168 }
  0x6b   :  { %441 = dma.done.wait [#allocation6], 272  }
  0x6c   :  { %442 = vsyncadd [#allocation6], 4294967024 }
  0x6d   :  { %443 = dma.done.wait [#allocation9], 272  }
  0x6e   :  { %444 = vsyncadd [#allocation9], 4294967024 }
  0x6f   :  { %445 = dma.done.wait [#allocation12], 16  }
  0x70   :  { %446 = vsyncadd [#allocation12], 4294967280  ;;  %v459_v0 = vmov 0.0   ;;  %vm460_vm0 = vmmov 0   ;;  %v278_v1 = vld [vmem:[#allocation5] sm:$0xff]   ;;  %v279_v2 = vld [vmem:[#allocation5 + $0x8] sm:$0xff]  }
  0x71   :  { %257 = vmatprep.subr.bf16.mxu0 %v459_v0  ;;  %261 = vmatprep.mubr.msk.bf16.mxu0 %vm460_vm0, %v459_v0  ;;  %v280_v3 = vld [vmem:[#allocation2] sm:$0xff]   ;;  %vm131_vm1 = vcmask 261120   ;;  %v247_v4 = vld [vmem:[#allocation7] ss:$0 sm:$0xff]  ;;  %v252_v30 = vld [vmem:[#allocation10] ss:$0 sm:$0xff] }
  0x72   :  { %258 = vmatpush3.bf16.msra.mxu0 %v278_v1  ;;  %v203_v32 = vld [vmem:[#allocation8] sm:$0xff]  ;;  %v253_v35 = vld [vmem:[#allocation11] ss:$0 sm:$0xff]  ;;  %v204_v38 = vld [vmem:[#allocation8 + $0x8] sm:$0xff]  ;;  %s461_s5 = smov [#allocation13]  }
  0x73   :  { %259 = vmatprep.subr.bf16.mxu0 %v459_v0  ;;  %s232_s9 = sshll.u32 %s461_s5, 4  ;;  %s233_s9 = int_to_ptr.vmem [resolvable:$true] %s232_s9 }
  0x74   :  { %s417_s10 = scalar_lea.vmem %s233_s9, 256  ;;  %p422_p7 = scmp.lt.s32.totalorder %s233_s9, %s233_s9 }
  0x75   :  { %p418_p6 = scmp.ne.s32.totalorder %s233_s9, %s417_s10  ;;  %p423_p8 = scmp.lt.s32.totalorder %s417_s10, %s417_s10 }
  0x76   :  { %260 = vmatpush3.bf16.msra.mxu0 %v279_v2 }
  0x77   :  { %p424_p9 = por %p423_p8, %p422_p7 }
  0x79   :  { %262 = vmatmul.mubr.msk.bf16.vlgmr.msra.gmra.mrb[0].mxu0 %vm131_vm1, %v280_v3  ;;  %p425_p10 = pnand %p424_p9, %p418_p6 }
 0x14c   :  { %v169_v5 = vpop.f32.mrb[0].mxu0 }
 0x14d   :  { %v170_v6 = vadd.f32 %v247_v4, %v169_v5  ;;  %v263_v7 = vpop.f32.mrb[1].mxu0 }
 0x14e   :  { %v172_v8 = vpop.f32.mrb[2].mxu0 }
 0x14f   :  { %v173_v9 = vadd.f32 %v247_v4, %v172_v8  ;;  %v264_v10 = vpop.f32.mrb[3].mxu0  ;;  %v176_v11 = vsel %vm131_vm1, %v170_v6, 0.0 }
 0x150   :  { %177 = vadd.xlane.f32.xlu0 %v176_v11 }
 0x151   :  { %v179_v12 = vsel %vm131_vm1, %v173_v9, 0.0 }
 0x154   :  { %180 = vadd.xlane.f32.xlu0 %v179_v12 }
 0x1dd   :  { %v178_v13 = vpop.xlane.xlu0 %177 }
 0x1de   :  { %v183_v14 = vmul.f32 0.03125, %v178_v13 }
 0x1e0   :  { %v185_v15 = vsub.f32 %v170_v6, %v183_v14 }
 0x1e1   :  { %v181_v16 = vpop.xlane.xlu0 %180 }
 0x1e2   :  { %v184_v17 = vmul.f32 0.03125, %v181_v16  ;;  %v187_v18 = vmul.f32 %v185_v15, %v185_v15 }
 0x1e4   :  { %v186_v19 = vsub.f32 %v173_v9, %v184_v17  ;;  %v189_v20 = vsel %vm131_vm1, %v187_v18, 0.0 }
 0x1e5   :  { %190 = vadd.xlane.f32.xlu1 %v189_v20 }
 0x1e6   :  { %v188_v21 = vmul.f32 %v186_v19, %v186_v19 }
 0x1e8   :  { %v192_v22 = vsel %vm131_vm1, %v188_v21, 0.0 }
 0x1e9   :  { %193 = vadd.xlane.f32.xlu1 %v192_v22 }
 0x272   :  { %v191_v23 = vpop.xlane.xlu1 %190 }
 0x273   :  { %v195_v24 = vmul.f32 0.03125, %v191_v23 }
 0x275   :  { %v197_v25 = vadd.f32 1e-05, %v195_v24 }
 0x276   :  { %v194_v26 = vpop.xlane.xlu1 %193 }
 0x277   :  { %281 = vrsqrt.f32 %v197_v25  ;;  %v196_v27 = vmul.f32 0.03125, %v194_v26 }
 0x279   :  { %v198_v28 = vadd.f32 1e-05, %v196_v27 }
 0x27b   :  { %283 = vrsqrt.f32 %v198_v28 }
 0x281   :  { %v282_v29 = vpop.eup %281 }
 0x282   :  { %v201_v31 = vmul.f32 %v282_v29, %v185_v15 }
 0x284   :  { %v212_v33 = vmul.f32 %v252_v30, %v201_v31 }
 0x285   :  { %v284_v34 = vpop.eup %283 }
 0x286   :  { %v202_v36 = vmul.f32 %v284_v34, %v186_v19  ;;  %v214_v37 = vadd.f32 %v212_v33, %v203_v32 }
 0x288   :  { %v213_v39 = vmul.f32 %v252_v30, %v202_v36  ;;  %v223_v40 = vadd.f32 %v253_v35, %v214_v37 }
 0x28a   :  { %v215_v41 = vadd.f32 %v213_v39, %v204_v38  ;;  %225 = vst.msk [vmem:[#allocation13] sm:$0xff] %vm131_vm1, %v223_v40 }
 0x28c   :  { %v224_v42 = vadd.f32 %v253_v35, %v215_v41 }
 0x28e   :  { %226 = vst.msk [vmem:[#allocation13 + $0x8] sm:$0xff] %vm131_vm1, %v224_v42 }
 0x28f   :  { %428 = shalt.err (!%p425_p10)
}
 0x290   :  { %s429_s29 = scalar_lea.hbm %s613_s6, 256 }
 0x291   :  { %p430_p11 = scmp.ne.s32.totalorder %s613_s6, %s429_s29  ;;  %p433_p12 = scmp.lt.u32.totalorder %s429_s29, %s613_s6 }
 0x293   :  { %p435_p13 = pnand %p433_p12, %p430_p11 }
 0x295   :  { %438 = shalt.err (!%p435_p13)
}
 0x296   :  { %238 = dma.vmem_to_hbm [thread:$0]  %s233_s9, 256, %s613_s6, [#allocation4], %s453_s1, %s453_s1, %s454_s21  }
 0x297   :  { %447 = dma.done.wait [#allocation4], 256  }
 0x298   :  { %448 = vsyncadd [#allocation4], 4294967040 }
 0x299   :  { %242 = vsyncpa [#allocation3], 1 }
 0x29a   :  { %243 = vsyncpa [#allocation6], 1 }
 0x29b   :  { %244 = vsyncpa [#allocation9], 1 }
 0x29c   :  { %245 = vsyncpa [#allocation12], 1 }
 0x29d   :  { %246 = vsyncpa [#allocation4], 1 }

// kernel: step3_vision_encoder.8
= control target key start
LH: loop header
LB: loop body
LE: loop exit
PB: predicated region body
PF: predicated region fallthrough
CT: control target
= control target key end

     0   :  { %8 = vsyncpa [#allocation4], 0  ;;  %s389_s0 = inlined_call_operand.hbm [shape: f32[16,32], index: 0, kind: input, shape index: {}]   ;;  %s390_s1 = inlined_call_operand.hbm [shape: bf16[32,96], index: 1, kind: input, shape index: {}]   ;;  %s391_s2 = inlined_call_operand.hbm [shape: f32[1,96], index: 2, kind: input, shape index: {}]   ;;  %s392_s3 = inlined_call_operand.hbm [shape: bf16[16,96], index: 3, kind: output, shape index: {}]  }
   0x1   :  { %9 = vsyncpa [#allocation7], 0 }
   0x2   :  { %10 = vsyncpa [#allocation5], 0  ;;  %s301_s12 = smov [#allocation6]   ;;  %s207_s16 = scalar_lea.hbm %s390_s1, 256 }
   0x3   :  { %s28_s13 = sshll.u32 %s301_s12, 4  ;;  %p208_p0 = scmp.ne.s32.totalorder %s390_s1, %s207_s16  ;;  %s29_s13 = int_to_ptr.vmem [resolvable:$true] %s28_s13 }
   0x4   :  { %p211_p1 = scmp.lt.u32.totalorder %s207_s16, %s390_s1 }
   0x6   :  { %p213_p2 = pnand %p211_p1, %p208_p0 }
   0x8   :  { %216 = shalt.err (!%p213_p2)
}
   0x9   :  { %s217_s21 = scalar_lea.vmem %s29_s13, 256  ;;  %p222_p4 = scmp.lt.s32.totalorder %s29_s13, %s29_s13 }
   0xa   :  { %p218_p3 = scmp.ne.s32.totalorder %s29_s13, %s217_s21  ;;  %p223_p5 = scmp.lt.s32.totalorder %s217_s21, %s217_s21 }
   0xc   :  { %p224_p6 = por %p223_p5, %p222_p4 }
   0xe   :  { %p225_p7 = pnand %p224_p6, %p218_p3 }
  0x10   :  { %228 = shalt.err (!%p225_p7)
}
  0x11   :  { %s302_s22 = smov 64   ;;  %s303_s23 = smov 4  }
  0x12   :  { %34 = dma.hbm_to_vmem [thread:$0]  %s390_s1, 256, %s29_s13, [#allocation7], %s302_s22, %s302_s22, %s303_s23  }
  0x13   :  { %s304_s26 = smov [#allocation3]   ;;  %s229_s30 = scalar_lea.hbm %s389_s0, 256 }
  0x14   :  { %s16_s27 = sshll.u32 %s304_s26, 4  ;;  %p230_p8 = scmp.ne.s32.totalorder %s389_s0, %s229_s30  ;;  %s17_s27 = int_to_ptr.vmem [resolvable:$true] %s16_s27 }
  0x15   :  { %p233_p9 = scmp.lt.u32.totalorder %s229_s30, %s389_s0 }
  0x17   :  { %p235_p10 = pnand %p233_p9, %p230_p8 }
  0x19   :  { %238 = shalt.err (!%p235_p10)
}
  0x1a   :  { %s239_s8 = scalar_lea.vmem %s17_s27, 256  ;;  %p244_p12 = scmp.lt.s32.totalorder %s17_s27, %s17_s27 }
  0x1b   :  { %p240_p11 = scmp.ne.s32.totalorder %s17_s27, %s239_s8  ;;  %p245_p13 = scmp.lt.s32.totalorder %s239_s8, %s239_s8 }
  0x1d   :  { %p246_p0 = por %p245_p13, %p244_p12 }
  0x1f   :  { %p247_p1 = pnand %p246_p0, %p240_p11 }
  0x21   :  { %250 = shalt.err (!%p247_p1)
}
  0x22   :  { %s305_s1 = smov 128   ;;  %s306_s9 = smov 8  }
  0x23   :  { %22 = dma.hbm_to_vmem [thread:$0]  %s389_s0, 256, %s17_s27, [#allocation4], %s305_s1, %s305_s1, %s306_s9  }
  0x24   :  { %s307_s12 = smov [#allocation8]   ;;  %s251_s16 = scalar_lea.hbm %s391_s2, 16 }
  0x25   :  { %s41_s13 = sshll.u32 %s307_s12, 4  ;;  %p252_p2 = scmp.ne.s32.totalorder %s391_s2, %s251_s16  ;;  %s42_s13 = int_to_ptr.vmem [resolvable:$true] %s41_s13 }
  0x26   :  { %p255_p3 = scmp.lt.u32.totalorder %s251_s16, %s391_s2 }
  0x28   :  { %p257_p4 = pnand %p255_p3, %p252_p2 }
  0x2a   :  { %260 = shalt.err (!%p257_p4)
}
  0x2b   :  { %s261_s21 = scalar_lea.vmem %s42_s13, 16  ;;  %s265_s0 = scalar_lea.vmem %s42_s13, 32 }
  0x2c   :  { %p262_p5 = scmp.ne.s32.totalorder %s42_s13, %s261_s21  ;;  %p266_p6 = scmp.lt.s32.totalorder %s42_s13, %s42_s13 }
  0x2d   :  { %p267_p7 = scmp.lt.s32.totalorder %s265_s0, %s261_s21 }
  0x2f   :  { %p268_p8 = por %p267_p7, %p266_p6 }
  0x31   :  { %p269_p9 = pnand %p268_p8, %p262_p5 }
  0x33   :  { %272 = shalt.err (!%p269_p9)
}
  0x34   :  { %44 = dma.hbm_to_vmem [thread:$0]  %s391_s2, 16, %s42_s13, [#allocation7]  }
  0x35   :  { %295 = dma.done.wait [#allocation4], 256  }
  0x36   :  { %296 = vsyncadd [#allocation4], 4294967040 }
  0x37   :  { %297 = dma.done.wait [#allocation7], 272  }
  0x38   :  { %298 = vsyncadd [#allocation7], 4294967024  ;;  %vm59_vm0 = vcmask 785408   ;;  %v308_v0 = vmov 0.0   ;;  %vm309_vm1 = vmmov 0   ;;  %v205_v1 = vld [vmem:[#allocation6] sm:$0xff]  }
  0x39   :  { %60 = vst.msk [vmem:[#allocation2] sm:$0xff] %vm59_vm0, %v308_v0  ;;  %61 = vst.msk [vmem:[#allocation2 + $0x8] sm:$0xff] %vm59_vm0, %v308_v0  ;;  %187 = vmatprep.subr.bf16.mxu0 %v308_v0  ;;  %191 = vmatprep.mubr.msk.bf16.mxu0 %vm309_vm1, %v308_v0  ;;  %v206_v2 = vld [vmem:[#allocation6 + $0x8] sm:$0xff]   ;;  %v64_v3 = vld [vmem:[#allocation3] sm:$0xff]  ;;  %vm83_vm2 = vcmask 261120   ;;  %vm155_vm3 = vcmask 781312  }
  0x3a   :  { %188 = vmatpush3.bf16.msra.mxu0 %v205_v1  ;;  %v65_v4 = vld [vmem:[#allocation3 + $0x8] sm:$0xff]  ;;  %v179_v14 = vld [vmem:[#allocation8] ss:$0 sm:$0xff]  ;;  %s310_s2 = smov [#allocation9]  }
  0x3b   :  { %189 = vmatprep.subr.bf16.mxu0 %v308_v0  ;;  %v66_v5 = vpack.c.bf16 %v65_v4, %v64_v3  ;;  %s163_s26 = sshll.u32 %s310_s2, 4  ;;  %s164_s26 = int_to_ptr.vmem [resolvable:$true] %s163_s26 }
  0x3c   :  { %s273_s27 = scalar_lea.vmem %s164_s26, 128  ;;  %p278_p11 = scmp.lt.s32.totalorder %s164_s26, %s164_s26 }
  0x3d   :  { %p274_p10 = scmp.ne.s32.totalorder %s164_s26, %s273_s27  ;;  %p279_p12 = scmp.lt.s32.totalorder %s273_s27, %s273_s27 }
  0x3e   :  { %190 = vmatpush3.bf16.msra.mxu0 %v206_v2 }
  0x3f   :  { %p280_p13 = por %p279_p12, %p278_p11 }
  0x40   :  { %v62_v6 = vld [vmem:[#allocation2] sm:$0xff]  ;;  %v63_v8 = vld [vmem:[#allocation2 + $0x8] sm:$0xff] }
  0x41   :  { %192 = vmatmul.mubr.msk.bf16.vlgmr.msra.gmra.mrb[0].mxu0 %vm83_vm2, %v66_v5  ;;  %p281_p0 = pnand %p280_p13, %p274_p10 }
 0x114   :  { %v121_v7 = vpop.f32.mrb[0].mxu0 }
 0x115   :  { %v128_v9 = vadd.f32 %v121_v7, %v62_v6  ;;  %v193_v10 = vpop.f32.mrb[1].mxu0 }
 0x116   :  { %v124_v11 = vpop.f32.mrb[2].mxu0 }
 0x117   :  { %131 = vst.msk [vmem:[#allocation2] sm:$0xff] %vm59_vm0, %v128_v9  ;;  %v129_v12 = vadd.f32 %v124_v11, %v63_v8  ;;  %v194_v13 = vpop.f32.mrb[3].mxu0 }
 0x119   :  { %132 = vst.msk [vmem:[#allocation2 + $0x8] sm:$0xff] %vm59_vm0, %v129_v12 }
 0x11e   :  { %v136_v15 = vld [vmem:[#allocation2] sm:$0xff] }
 0x11f   :  { %v145_v16 = vadd.f32 %v179_v14, %v136_v15 }
 0x120   :  { %v137_v17 = vld [vmem:[#allocation2 + $0x8] sm:$0xff] }
 0x121   :  { %v146_v18 = vadd.f32 %v179_v14, %v137_v17  ;;  %v182_v19 = vpack.c.bf16 %v145_v16, %v145_v16 }
 0x123   :  { %v183_v20 = vpack.c.bf16 %v146_v18, %v146_v18  ;;  %156 = vst.msk [vmem:[#allocation9] sm:$0xf] %vm155_vm3, %v182_v19 }
 0x125   :  { %157 = vst.msk [vmem:[#allocation9 + $0x4] sm:$0xf] %vm155_vm3, %v183_v20 }
 0x126   :  { %284 = shalt.err (!%p281_p0)
}
 0x127   :  { %s285_s30 = scalar_lea.hbm %s392_s3, 128 }
 0x128   :  { %p286_p1 = scmp.ne.s32.totalorder %s392_s3, %s285_s30  ;;  %p289_p2 = scmp.lt.u32.totalorder %s285_s30, %s392_s3 }
 0x12a   :  { %p291_p3 = pnand %p289_p2, %p286_p1 }
 0x12c   :  { %294 = shalt.err (!%p291_p3)
}
 0x12d   :  { %169 = dma.vmem_to_hbm [thread:$0]  %s164_s26, 128, %s392_s3, [#allocation5], %s302_s22, %s302_s22, %s303_s23  }
 0x12e   :  { %299 = dma.done.wait [#allocation5], 128  }
 0x12f   :  { %300 = vsyncadd [#allocation5], 4294967168 }
 0x130   :  { %173 = vsyncpa [#allocation4], 1 }
 0x131   :  { %174 = vsyncpa [#allocation7], 1 }
 0x132   :  { %175 = vsyncpa [#allocation5], 1 }

// kernel: step3_vision_encoder.11
= control target key start
LH: loop header
LB: loop body
LE: loop exit
PB: predicated region body
PF: predicated region fallthrough
CT: control target
= control target key end

     0   :  { %12 = vsyncpa [#allocation4], 0  ;;  %s860_s0 = inlined_call_operand.hbm [shape: f32[16,32], index: 0, kind: input, shape index: {}]   ;;  %s861_s1 = inlined_call_operand.hbm [shape: bf16[32,128], index: 1, kind: input, shape index: {}]   ;;  %s862_s2 = inlined_call_operand.hbm [shape: f32[1,128], index: 2, kind: input, shape index: {}]   ;;  %s863_s3 = inlined_call_operand.hbm [shape: bf16[128,32], index: 3, kind: input, shape index: {}]   ;;  %s864_s4 = inlined_call_operand.hbm [shape: f32[1,32], index: 4, kind: input, shape index: {}]   ;;  %s865_s5 = inlined_call_operand.hbm [shape: f32[1,32], index: 5, kind: input, shape index: {}]   ;;  %s866_s6 = inlined_call_operand.hbm [shape: f32[1,32], index: 6, kind: input, shape index: {}]   ;;  %s867_s7 = inlined_call_operand.hbm [shape: f32[16,32], index: 7, kind: output, shape index: {}]  }
   0x1   :  { %13 = vsyncpa [#allocation7], 0 }
   0x2   :  { %14 = vsyncpa [#allocation10], 0 }
   0x3   :  { %15 = vsyncpa [#allocation13], 0 }
   0x4   :  { %16 = vsyncpa [#allocation5], 0  ;;  %s685_s24 = smov [#allocation6]   ;;  %s499_s28 = scalar_lea.hbm %s861_s1, 256 }
   0x5   :  { %s34_s25 = sshll.u32 %s685_s24, 4  ;;  %p500_p0 = scmp.ne.s32.totalorder %s861_s1, %s499_s28  ;;  %s35_s25 = int_to_ptr.vmem [resolvable:$true] %s34_s25 }
   0x6   :  { %p503_p1 = scmp.lt.u32.totalorder %s499_s28, %s861_s1 }
   0x8   :  { %p505_p2 = pnand %p503_p1, %p500_p0 }
   0xa   :  { %508 = shalt.err (!%p505_p2)
}
   0xb   :  { %s509_s10 = scalar_lea.vmem %s35_s25, 256  ;;  %p514_p4 = scmp.lt.s32.totalorder %s35_s25, %s35_s25 }
   0xc   :  { %p510_p3 = scmp.ne.s32.totalorder %s35_s25, %s509_s10  ;;  %p515_p5 = scmp.lt.s32.totalorder %s509_s10, %s509_s10 }
   0xe   :  { %p516_p6 = por %p515_p5, %p514_p4 }
  0x10   :  { %p517_p7 = pnand %p516_p6, %p510_p3 }
  0x12   :  { %520 = shalt.err (!%p517_p7)
}
  0x13   :  { %s686_s11 = smov 64   ;;  %s687_s12 = smov 4  }
  0x14   :  { %40 = dma.hbm_to_vmem [thread:$0]  %s861_s1, 256, %s35_s25, [#allocation7], %s686_s11, %s686_s11, %s687_s12  }
  0x15   :  { %s688_s15 = smov [#allocation9]   ;;  %s689_s17 = smov [#allocation12]  }
  0x16   :  { %s56_s16 = sshll.u32 %s688_s15, 4  ;;  %s79_s18 = sshll.u32 %s689_s17, 4  ;;  %s57_s16 = int_to_ptr.vmem [resolvable:$true] %s56_s16  ;;  %s80_s18 = int_to_ptr.vmem [resolvable:$true] %s79_s18 }
  0x17   :  { %s521_s21 = scalar_lea.hbm %s863_s3, 1024 }
  0x18   :  { %p522_p8 = scmp.ne.s32.totalorder %s863_s3, %s521_s21  ;;  %p525_p9 = scmp.lt.u32.totalorder %s521_s21, %s863_s3 }
  0x1a   :  { %p527_p10 = pnand %p525_p9, %p522_p8 }
  0x1c   :  { %530 = shalt.err (!%p527_p10)
}
  0x1d   :  { %s531_s1 = scalar_lea.vmem %s57_s16, 1024  ;;  %p536_p12 = scmp.lt.s32.totalorder %s57_s16, %s57_s16 }
  0x1e   :  { %p532_p11 = scmp.ne.s32.totalorder %s57_s16, %s531_s1  ;;  %p537_p13 = scmp.lt.s32.totalorder %s531_s1, %s531_s1 }
  0x20   :  { %p538_p0 = por %p537_p13, %p536_p12 }
  0x22   :  { %p539_p1 = pnand %p538_p0, %p532_p11 }
  0x24   :  { %542 = shalt.err (!%p539_p1)
}
  0x25   :  { %62 = dma.hbm_to_vmem [thread:$0]  %s863_s3, 1024, %s57_s16, [#allocation10], %s686_s11, %s686_s11, %s687_s12  }
  0x26   :  { %s543_s30 = scalar_lea.hbm %s865_s5, 16 }
  0x27   :  { %p544_p2 = scmp.ne.s32.totalorder %s865_s5, %s543_s30  ;;  %p547_p3 = scmp.lt.u32.totalorder %s543_s30, %s865_s5 }
  0x29   :  { %p549_p4 = pnand %p547_p3, %p544_p2 }
  0x2b   :  { %552 = shalt.err (!%p549_p4)
}
  0x2c   :  { %s553_s14 = scalar_lea.vmem %s80_s18, 16  ;;  %s557_s15 = scalar_lea.vmem %s80_s18, 32 }
  0x2d   :  { %p554_p5 = scmp.ne.s32.totalorder %s80_s18, %s553_s14  ;;  %p558_p6 = scmp.lt.s32.totalorder %s80_s18, %s80_s18 }
  0x2e   :  { %p559_p7 = scmp.lt.s32.totalorder %s557_s15, %s553_s14 }
  0x30   :  { %p560_p8 = por %p559_p7, %p558_p6 }
  0x32   :  { %p561_p9 = pnand %p560_p8, %p554_p5 }
  0x34   :  { %564 = shalt.err (!%p561_p9)
}
  0x35   :  { %82 = dma.hbm_to_vmem [thread:$0]  %s865_s5, 16, %s80_s18, [#allocation13]  }
  0x36   :  { %s690_s12 = smov [#allocation3]   ;;  %s565_s20 = scalar_lea.hbm %s860_s0, 256 }
  0x37   :  { %s22_s16 = sshll.u32 %s690_s12, 4  ;;  %p566_p10 = scmp.ne.s32.totalorder %s860_s0, %s565_s20  ;;  %s23_s16 = int_to_ptr.vmem [resolvable:$true] %s22_s16 }
  0x38   :  { %p569_p11 = scmp.lt.u32.totalorder %s565_s20, %s860_s0 }
  0x3a   :  { %p571_p12 = pnand %p569_p11, %p566_p10 }
  0x3c   :  { %574 = shalt.err (!%p571_p12)
}
  0x3d   :  { %s575_s26 = scalar_lea.vmem %s23_s16, 256  ;;  %p580_p0 = scmp.lt.s32.totalorder %s23_s16, %s23_s16 }
  0x3e   :  { %p576_p13 = scmp.ne.s32.totalorder %s23_s16, %s575_s26  ;;  %p581_p1 = scmp.lt.s32.totalorder %s575_s26, %s575_s26 }
  0x40   :  { %p582_p2 = por %p581_p1, %p580_p0 }
  0x42   :  { %p583_p3 = pnand %p582_p2, %p576_p13 }
  0x44   :  { %586 = shalt.err (!%p583_p3)
}
  0x45   :  { %s691_s5 = smov 128   ;;  %s692_s18 = smov 8  }
  0x46   :  { %28 = dma.hbm_to_vmem [thread:$0]  %s860_s0, 256, %s23_s16, [#allocation4], %s691_s5, %s691_s5, %s692_s18  }
  0x47   :  { %s693_s27 = smov [#allocation8]   ;;  %s694_s29 = smov [#allocation11]  }
  0x48   :  { %s47_s28 = sshll.u32 %s693_s27, 4  ;;  %s69_s30 = sshll.u32 %s694_s29, 4  ;;  %s48_s28 = int_to_ptr.vmem [resolvable:$true] %s47_s28  ;;  %s70_s30 = int_to_ptr.vmem [resolvable:$true] %s69_s30 }
  0x49   :  { %s587_s10 = scalar_lea.hbm %s862_s2, 16 }
  0x4a   :  { %p588_p4 = scmp.ne.s32.totalorder %s862_s2, %s587_s10  ;;  %p591_p5 = scmp.lt.u32.totalorder %s587_s10, %s862_s2 }
  0x4c   :  { %p593_p6 = pnand %p591_p5, %p588_p4 }
  0x4e   :  { %596 = shalt.err (!%p593_p6)
}
  0x4f   :  { %s597_s0 = scalar_lea.vmem %s48_s28, 16  ;;  %s601_s11 = scalar_lea.vmem %s48_s28, 32 }
  0x50   :  { %p598_p7 = scmp.ne.s32.totalorder %s48_s28, %s597_s0  ;;  %p602_p8 = scmp.lt.s32.totalorder %s48_s28, %s48_s28 }
  0x51   :  { %p603_p9 = scmp.lt.s32.totalorder %s601_s11, %s597_s0 }
  0x53   :  { %p604_p10 = por %p603_p9, %p602_p8 }
  0x55   :  { %p605_p11 = pnand %p604_p10, %p598_p7 }
  0x57   :  { %608 = shalt.err (!%p605_p11)
}
  0x58   :  { %50 = dma.hbm_to_vmem [thread:$0]  %s862_s2, 16, %s48_s28, [#allocation7]  }
  0x59   :  { %s609_s20 = scalar_lea.hbm %s864_s4, 16 }
  0x5a   :  { %p610_p12 = scmp.ne.s32.totalorder %s864_s4, %s609_s20  ;;  %p613_p13 = scmp.lt.u32.totalorder %s609_s20, %s864_s4 }
  0x5c   :  { %p615_p0 = pnand %p613_p13, %p610_p12 }
  0x5e   :  { %618 = shalt.err (!%p615_p0)
}
  0x5f   :  { %s619_s26 = scalar_lea.vmem %s70_s30, 16  ;;  %s623_s1 = scalar_lea.vmem %s70_s30, 32 }
  0x60   :  { %p620_p1 = scmp.ne.s32.totalorder %s70_s30, %s619_s26  ;;  %p624_p2 = scmp.lt.s32.totalorder %s70_s30, %s70_s30 }
  0x61   :  { %p625_p3 = scmp.lt.s32.totalorder %s623_s1, %s619_s26 }
  0x63   :  { %p626_p4 = por %p625_p3, %p624_p2 }
  0x65   :  { %p627_p5 = pnand %p626_p4, %p620_p1 }
  0x67   :  { %630 = shalt.err (!%p627_p5)
}
  0x68   :  { %72 = dma.hbm_to_vmem [thread:$0]  %s864_s4, 16, %s70_s30, [#allocation10]  }
  0x69   :  { %s695_s27 = smov [#allocation14]   ;;  %s631_s9 = scalar_lea.hbm %s866_s6, 16 }
  0x6a   :  { %s89_s28 = sshll.u32 %s695_s27, 4  ;;  %p632_p6 = scmp.ne.s32.totalorder %s866_s6, %s631_s9  ;;  %s90_s28 = int_to_ptr.vmem [resolvable:$true] %s89_s28 }
  0x6b   :  { %p635_p7 = scmp.lt.u32.totalorder %s631_s9, %s866_s6 }
  0x6d   :  { %p637_p8 = pnand %p635_p7, %p632_p6 }
  0x6f   :  { %640 = shalt.err (!%p637_p8)
}
  0x70   :  { %s641_s3 = scalar_lea.vmem %s90_s28, 16  ;;  %s645_s4 = scalar_lea.vmem %s90_s28, 32 }
  0x71   :  { %p642_p9 = scmp.ne.s32.totalorder %s90_s28, %s641_s3  ;;  %p646_p10 = scmp.lt.s32.totalorder %s90_s28, %s90_s28 }
  0x72   :  { %p647_p11 = scmp.lt.s32.totalorder %s645_s4, %s641_s3 }
  0x74   :  { %p648_p12 = por %p647_p11, %p646_p10 }
  0x76   :  { %p649_p13 = pnand %p648_p12, %p642_p9 }
  0x78   :  { %652 = shalt.err (!%p649_p13)
}
  0x79   :  { %92 = dma.hbm_to_vmem [thread:$0]  %s866_s6, 16, %s90_s28, [#allocation13]  }
  0x7a   :  { %675 = dma.done.wait [#allocation4], 256  }
  0x7b   :  { %676 = vsyncadd [#allocation4], 4294967040 }
  0x7c   :  { %677 = dma.done.wait [#allocation7], 272  }
  0x7d   :  { %678 = vsyncadd [#allocation7], 4294967024 }
  0x7e   :  { %679 = dma.done.wait [#allocation10], 1040  }
  0x7f   :  { %680 = vsyncadd [#allocation10], 4294966256 }
  0x80   :  { %681 = dma.done.wait [#allocation13], 32  }
  0x81   :  { %682 = vsyncadd [#allocation13], 4294967264  ;;  %vm119_vm0 = vcmask 261120   ;;  %v696_v0 = vmov 0.0   ;;  %vm697_vm1 = vmmov 0   ;;  %v477_v1 = vld [vmem:[#allocation6] sm:$0xff]  }
  0x82   :  { %435 = vmatprep.subr.bf16.mxu0 %v696_v0  ;;  %439 = vmatprep.mubr.msk.bf16.mxu0 %vm697_vm1, %v696_v0  ;;  %120 = vst.msk [vmem:[#allocation2] sm:$0xff] %vm119_vm0, %v696_v0  ;;  %121 = vst.msk [vmem:[#allocation2 + $0x8] sm:$0xff] %vm119_vm0, %v696_v0  ;;  %v478_v2 = vld [vmem:[#allocation6 + $0x8] sm:$0xff]   ;;  %v828_v3 = vld [vmem:[#allocation3] sm:$0xff]  ;;  %s698_s6 = smov [#allocation15]  }
  0x83   :  { %443 = vmatprep.subr.bf16.mxu1 %v696_v0  ;;  %459 = vmatprep.mubr.msk.bf16.mxu1 %vm697_vm1, %v696_v0  ;;  %v830_v4 = vld [vmem:[#allocation3 + $0x8] sm:$0xff]  ;;  %v481_v8 = vld [vmem:[#allocation9 + $0x10] sm:$0xff]   ;;  %v482_v9 = vld [vmem:[#allocation9 + $0x18] sm:$0xff]   ;;  %s391_s11 = sshll.u32 %s698_s6, 4  ;;  %s392_s11 = int_to_ptr.vmem [resolvable:$true] %s391_s11 }
  0x84   :  { %436 = vmatpush3.bf16.msra.mxu0 %v477_v1  ;;  %v124_v5 = vpack.c.bf16 %v830_v4, %v828_v3  ;;  %v479_v6 = vld [vmem:[#allocation9] sm:$0xff]   ;;  %v480_v7 = vld [vmem:[#allocation9 + $0x8] sm:$0xff]   ;;  %v485_v12 = vld [vmem:[#allocation9 + $0x30] sm:$0xff]   ;;  %s653_s12 = scalar_lea.vmem %s392_s11, 256  ;;  %p658_p1 = scmp.lt.s32.totalorder %s392_s11, %s392_s11 }
  0x85   :  { %437 = vmatprep.subr.bf16.mxu0 %v696_v0  ;;  %444 = vmatpush3.bf16.msra.mxu1 %v479_v6  ;;  %v483_v10 = vld [vmem:[#allocation9 + $0x20] sm:$0xff]   ;;  %v484_v11 = vld [vmem:[#allocation9 + $0x28] sm:$0xff]   ;;  %v486_v13 = vld [vmem:[#allocation9 + $0x38] sm:$0xff]   ;;  %p654_p0 = scmp.ne.s32.totalorder %s392_s11, %s653_s12  ;;  %p659_p2 = scmp.lt.s32.totalorder %s653_s12, %s653_s12 }
  0x86   :  { %445 = vmatprep.subr.bf16.mxu1 %v696_v0  ;;  %v406_v14 = vld [vmem:[#allocation8] ss:$0 sm:$0xff]  ;;  %v420_v42 = vld [vmem:[#allocation11] ss:$0 sm:$0xff] }
  0x87   :  { %p660_p3 = por %p659_p2, %p658_p1 }
  0x88   :  { %438 = vmatpush3.bf16.msra.mxu0 %v478_v2  ;;  %v421_v2 = vld [vmem:[#allocation12] ss:$0 sm:$0xff] }
  0x89   :  { %446 = vmatpush3.bf16.msra.mxu1 %v480_v7  ;;  %v209_v34 = vld [vmem:[#allocation2] sm:$0xff]  ;;  %v210_v36 = vld [vmem:[#allocation2 + $0x8] sm:$0xff]  ;;  %p661_p4 = pnand %p660_p3, %p654_p0 }
  0x8a   :  { %447 = vmatprep.subr.bf16.mxu1 %v696_v0 }
  0x8b   :  { %440 = vmatmul.mubr.msk.bf16.vlgmr.msra.gmra.mrb[0].mxu0 %vm119_vm0, %v124_v5 }
  0x8d   :  { %448 = vmatpush3.bf16.msra.mxu1 %v481_v8  ;;  %v422_v8 = vld [vmem:[#allocation14] ss:$0 sm:$0xff] }
  0x8e   :  { %449 = vmatprep.subr.bf16.mxu1 %v696_v0 }
  0x91   :  { %450 = vmatpush3.bf16.msra.mxu1 %v482_v9 }
  0x92   :  { %451 = vmatprep.subr.bf16.mxu1 %v696_v0 }
  0x95   :  { %452 = vmatpush3.bf16.msra.mxu1 %v483_v10 }
  0x96   :  { %453 = vmatprep.subr.bf16.mxu1 %v696_v0 }
  0x99   :  { %454 = vmatpush3.bf16.msra.mxu1 %v484_v11 }
  0x9a   :  { %455 = vmatprep.subr.bf16.mxu1 %v696_v0 }
  0x9d   :  { %456 = vmatpush3.bf16.msra.mxu1 %v485_v12 }
  0x9e   :  { %457 = vmatprep.subr.bf16.mxu1 %v696_v0 }
  0xa1   :  { %458 = vmatpush3.bf16.msra.mxu1 %v486_v13 }
 0x15e   :  { %v186_v15 = vpop.f32.mrb[0].mxu0 }
 0x15f   :  { %v187_v16 = vadd.f32 %v406_v14, %v186_v15  ;;  %v441_v17 = vpop.f32.mrb[1].mxu0 }
 0x160   :  { %v189_v18 = vpop.f32.mrb[2].mxu0 }
 0x161   :  { %v410_v19 = vmul.f32 -1.702, %v187_v16  ;;  %v190_v20 = vadd.f32 %v406_v14, %v189_v18  ;;  %v442_v21 = vpop.f32.mrb[3].mxu0 }
 0x163   :  { %v197_v22 = vmul.f32 1.442695, %v410_v19  ;;  %v411_v23 = vmul.f32 -1.702, %v190_v20 }
 0x165   :  { %487 = vpow2.f32 %v197_v22  ;;  %v199_v24 = vmul.f32 1.442695, %v411_v23 }
 0x167   :  { %489 = vpow2.f32 %v199_v24 }
 0x16f   :  { %v488_v25 = vpop.eup %487 }
 0x170   :  { %v201_v26 = vadd.f32 1.0, %v488_v25 }
 0x171   :  { %v490_v27 = vpop.eup %489 }
 0x172   :  { %491 = vrcp.f32 %v201_v26  ;;  %v202_v28 = vadd.f32 1.0, %v490_v27 }
 0x174   :  { %493 = vrcp.f32 %v202_v28 }
 0x17c   :  { %v492_v29 = vpop.eup %491 }
 0x17d   :  { %v207_v31 = vmul.f32 %v492_v29, %v187_v16 }
 0x17e   :  { %v494_v30 = vpop.eup %493 }
 0x17f   :  { %v208_v32 = vmul.f32 %v494_v30, %v190_v20 }
 0x181   :  { %v211_v33 = vpack.c.bf16 %v208_v32, %v207_v31 }
 0x183   :  { %460 = vmatmul.mubr.bf16.vlgmr.msra.gmra.mrb[0].mxu1 %v211_v33 }
 0x256   :  { %v310_v35 = vpop.f32.mrb[0].mxu1 }
 0x257   :  { %v317_v37 = vadd.f32 %v310_v35, %v209_v34  ;;  %v461_v38 = vpop.f32.mrb[1].mxu1 }
 0x258   :  { %v313_v39 = vpop.f32.mrb[2].mxu1 }
 0x259   :  { %319 = vst.msk [vmem:[#allocation2] sm:$0xff] %vm119_vm0, %v317_v37  ;;  %v318_v40 = vadd.f32 %v313_v39, %v210_v36  ;;  %v462_v41 = vpop.f32.mrb[3].mxu1 }
 0x25b   :  { %320 = vst.msk [vmem:[#allocation2 + $0x8] sm:$0xff] %vm119_vm0, %v318_v40 }
 0x260   :  { %v324_v43 = vld [vmem:[#allocation2] sm:$0xff] }
 0x261   :  { %v333_v44 = vadd.f32 %v420_v42, %v324_v43 }
 0x262   :  { %v325_v45 = vld [vmem:[#allocation2 + $0x8] sm:$0xff] }
 0x263   :  { %v335_v46 = vsel %vm119_vm0, %v333_v44, 0.0  ;;  %v334_v47 = vadd.f32 %v420_v42, %v325_v45 }
 0x264   :  { %336 = vadd.xlane.f32.xlu0 %v335_v46 }
 0x265   :  { %v338_v48 = vsel %vm119_vm0, %v334_v47, 0.0 }
 0x268   :  { %339 = vadd.xlane.f32.xlu0 %v338_v48 }
 0x2f1   :  { %v337_v49 = vpop.xlane.xlu0 %336 }
 0x2f2   :  { %v342_v50 = vmul.f32 0.03125, %v337_v49 }
 0x2f4   :  { %v344_v51 = vsub.f32 %v333_v44, %v342_v50 }
 0x2f5   :  { %v340_v52 = vpop.xlane.xlu0 %339 }
 0x2f6   :  { %v343_v53 = vmul.f32 0.03125, %v340_v52  ;;  %v346_v54 = vmul.f32 %v344_v51, %v344_v51 }
 0x2f8   :  { %v345_v55 = vsub.f32 %v334_v47, %v343_v53  ;;  %v348_v56 = vsel %vm119_vm0, %v346_v54, 0.0 }
 0x2f9   :  { %349 = vadd.xlane.f32.xlu1 %v348_v56 }
 0x2fa   :  { %v347_v57 = vmul.f32 %v345_v55, %v345_v55 }
 0x2fc   :  { %v351_v58 = vsel %vm119_vm0, %v347_v57, 0.0 }
 0x2fd   :  { %352 = vadd.xlane.f32.xlu1 %v351_v58 }
 0x386   :  { %v350_v59 = vpop.xlane.xlu1 %349 }
 0x387   :  { %v354_v60 = vmul.f32 0.03125, %v350_v59 }
 0x389   :  { %v356_v61 = vadd.f32 1e-05, %v354_v60 }
 0x38a   :  { %v353_v62 = vpop.xlane.xlu1 %352 }
 0x38b   :  { %495 = vrsqrt.f32 %v356_v61  ;;  %v355_v63 = vmul.f32 0.03125, %v353_v62 }
 0x38d   :  { %v357_v0 = vadd.f32 1e-05, %v355_v63 }
 0x38f   :  { %497 = vrsqrt.f32 %v357_v0 }
 0x395   :  { %v496_v1 = vpop.eup %495 }
 0x396   :  { %v360_v5 = vmul.f32 %v496_v1, %v344_v51 }
 0x398   :  { %v371_v6 = vmul.f32 %v421_v2, %v360_v5 }
 0x399   :  { %v498_v7 = vpop.eup %497 }
 0x39a   :  { %v361_v9 = vmul.f32 %v498_v7, %v345_v55  ;;  %v373_v10 = vadd.f32 %v371_v6, %v828_v3 }
 0x39c   :  { %v372_v11 = vmul.f32 %v421_v2, %v361_v9  ;;  %v382_v12 = vadd.f32 %v422_v8, %v373_v10 }
 0x39e   :  { %v374_v13 = vadd.f32 %v372_v11, %v830_v4  ;;  %384 = vst.msk [vmem:[#allocation15] sm:$0xff] %vm119_vm0, %v382_v12 }
 0x3a0   :  { %v383_v14 = vadd.f32 %v422_v8, %v374_v13 }
 0x3a2   :  { %385 = vst.msk [vmem:[#allocation15 + $0x8] sm:$0xff] %vm119_vm0, %v383_v14 }
 0x3a3   :  { %664 = shalt.err (!%p661_p4)
}
 0x3a4   :  { %s665_s19 = scalar_lea.hbm %s867_s7, 256 }
 0x3a5   :  { %p666_p5 = scmp.ne.s32.totalorder %s867_s7, %s665_s19  ;;  %p669_p6 = scmp.lt.u32.totalorder %s665_s19, %s867_s7 }
 0x3a7   :  { %p671_p7 = pnand %p669_p6, %p666_p5 }
 0x3a9   :  { %674 = shalt.err (!%p671_p7)
}
 0x3aa   :  { %397 = dma.vmem_to_hbm [thread:$0]  %s392_s11, 256, %s867_s7, [#allocation5], %s691_s5, %s691_s5, %s692_s18  }
 0x3ab   :  { %683 = dma.done.wait [#allocation5], 256  }
 0x3ac   :  { %684 = vsyncadd [#allocation5], 4294967040 }
 0x3ad   :  { %401 = vsyncpa [#allocation4], 1 }
 0x3ae   :  { %402 = vsyncpa [#allocation7], 1 }
 0x3af   :  { %403 = vsyncpa [#allocation10], 1 }
 0x3b0   :  { %404 = vsyncpa [#allocation13], 1 }
 0x3b1   :  { %405 = vsyncpa [#allocation5], 1 }

// kernel: step3_vision_encoder.9
= control target key start
LH: loop header
LB: loop body
LE: loop exit
PB: predicated region body
PF: predicated region fallthrough
CT: control target
= control target key end

     0   :  { %6 = vsyncpa [#allocation4], 0  ;;  %s2714_s0 = inlined_call_operand.hbm [shape: bf16[2,8,3,4,8], index: 0, kind: input, shape index: {}]   ;;  %s2715_s1 = inlined_call_operand.hbm [shape: bf16[2,8,32], index: 1, kind: output, shape index: {}]  }
   0x1   :  { %8 = vsyncpa [#allocation4 + $0x1], 0 }
   0x2   :  { %9 = vsyncpa [#allocation5], 0 }
   0x3   :  { %11 = vsyncpa [#allocation5 + $0x1], 0  ;;  %s2143_s6 = smov 0   ;;  %s2145_s7 = smov 0  }
   0x4   :  { %s2147_s8 = smov 0   ;;  %s2149_s9 = smov 0  }
   0x5   :  { %s2151_s10 = smov 0   ;;  %s2153_s11 = smov 0  }
   0x6 LB: > { %s1711_s12 = sadd.s32 4294967295, %s2122_s11   ;;  %s1712_s13 = sadd.s32 4294967294, %s2122_s11   ;;  %s2122_s11 = sphi %s2153_s11, %s17_s11   ;;  %s2118_s10 = sphi %s2151_s10, %s2738_s10   ;;  %s2114_s9 = sphi %s2149_s9, %s2737_s9   ;;  %s2110_s8 = sphi %s2147_s8, %s2736_s8   ;;  %s2106_s7 = sphi %s2145_s7, %s2735_s7   ;;  %s2102_s6 = sphi %s2143_s6, %s2734_s6  }
   0x7   : > { %s29_s14 = sadd.s32 1, %s2118_s10  ;;  %s38_s15 = sadd.s32 1, %s2110_s8 }
   0x8   : > { %p31_p0 = scmp.ge.s32.totalorder %s29_s14, 2  ;;  %p45_p1 = scmp.ne.s32.totalorder %s2110_s8, %s2106_s7 }
   0x9   : > { %p46_p2 = scmp.eq.s32.totalorder %s2122_s11, 0  ;;  %p51_p3 = scmp.ne.s32.totalorder %s2106_s7, %s2102_s6 }
   0xa   : > { %s2740_s14 = smov (%p31_p0, %s29_s14), 0  ;;  %p52_p5 = scmp.eq.s32.totalorder %s1711_s12, 0 }
   0xb   : > { %p2184_p4 = por %p46_p2, %p45_p1  ;;  %s33_s17 = ssub.s32 %s2118_s10, %s2740_s14 }
   0xc   : > { %p77_p6 = scmp.eq.s32.totalorder %s1711_s12, 1  ;;  %p36_p7 = scmp.eq.s32.totalorder %s33_s17, 0 }
   0xd   : > { %p2190_p8 = por %p52_p5, %p51_p3  ;;  %p83_p10 = scmp.eq.s32.totalorder %s1712_s13, 1 }
   0xe   : > { %p2194_p9 = por %p77_p6, %p45_p1  ;;  %p1937_p13 = scmp.lt.s32.totalorder %s2122_s11, 2 }
   0xf   : > { %s2199_s20 = scalar_select %p36_p7, %s2110_s8, %s38_s15  }
  0x10   : > { %s2723_s19 = scalar_select %p2194_p9, 1, 0 }
  0x11   : > { %p2201_p11 = por %p83_p10, %p51_p3  ;;  %s103_s22 = sand.u32 1, %s2110_s8  }
  0x12   : > { %s1922_s23 = smul.u32 48, %s103_s22  ;;  %p2211_p0 = pnand %p1937_p13, %p2184_p4 }
  0x13   : > { %s2724_s21 = scalar_select %p2201_p11, 1, 0 }
  0x14   : > { %s1923_s24 = smul.u32 768, %s2118_s10  ;;  %s107_s29 = scalar_lea.vmem [#allocation3], %s1922_s23 }
  0x15   : > { %s115_s30 = sshll.u32 %s107_s29, 4  ;;  %s2223_s2 = scalar_lea.sflag [#allocation4], %s103_s22  ;;  %s2220_s30 = int_to_ptr.vmem [resolvable:$true] %s115_s30 }
  0x16   : > { %s2218_s28 = scalar_lea.hbm %s2714_s0, %s1923_s24  ;;  %p2012_p3 = pneg %p2211_p0 }
  0x17   : > { %s2010_s3 = scalar_lea.hbm %s2218_s28, 768  ;;  %s2015_s12 = scalar_lea.hbm %s2714_s0, 1536 }
  0x18   : > { %p2011_p2 = scmp.ne.s32.totalorder %s2218_s28, %s2010_s3  ;;  %p2016_p6 = scmp.lt.u32.totalorder %s2218_s28, %s2714_s0 }
  0x19   : > { %p2017_p7 = scmp.lt.u32.totalorder %s2015_s12, %s2010_s3  ;;  %p2019_p13 = scmp.lt.u32.totalorder %s2010_s3, %s2218_s28 }
  0x1a   : > { %p2013_p4 = pnand %p2012_p3, %p2011_p2 }
  0x1b   : > { %p2018_p10 = por %p2017_p7, %p2016_p6 }
  0x1c   : > { %p2014_p5 = pneg %p2013_p4 }
  0x1d   : > { %p2020_p12 = por %p2019_p13, %p2018_p10 }
  0x1f   : > { %p2021_p1 = pnand %p2020_p12, %p2014_p5 }
  0x21   : > { %2024 = shalt.err (!%p2021_p1)
}
  0x22   : > { %s2025_s16 = scalar_lea.vmem %s2220_s30, 768  ;;  %s2124_s17 = smov [#allocation3]  }
  0x23   : > { %p2026_p2 = scmp.ne.s32.totalorder %s2220_s30, %s2025_s16  ;;  %s2030_s22 = sshll.u32 %s2124_s17, 4  ;;  %s2031_s22 = int_to_ptr.vmem [resolvable:$false] %s2030_s22 }
  0x24   : > { %s2032_s23 = scalar_lea.vmem %s2031_s22, 1536  ;;  %p2033_p9 = scmp.lt.s32.totalorder %s2220_s30, %s2031_s22 }
  0x25   : > { %p2028_p4 = pnand %p2026_p2, %p2012_p3  ;;  %p2034_p6 = scmp.lt.s32.totalorder %s2032_s23, %s2025_s16 }
  0x27   : > { %p2029_p11 = pneg %p2028_p4  ;;  %p2035_p7 = por %p2034_p6, %p2033_p9 }
  0x29   : > { %p2036_p10 = pnand %p2035_p7, %p2029_p11 }
  0x2b   : > { %2039 = shalt.err (!%p2036_p10)
}
  0x2c   : > { %s2125_s24 = smov 32   ;;  %s2126_s26 = smov 2  }
  0x2d   : > { %1932 = dma.hbm_to_vmem [thread:$0]  (!%p2211_p0), %s2218_s28, 768, %s2220_s30, %s2223_s2, %s2125_s24, %s2125_s24, %s2126_s26  }
  0x2e   : > { %p123_p12 = scmp.lt.s32.totalorder %s2122_s11, 3  ;;  %p2726_p1 = scmp.ge.s32.totalorder %s2122_s11, 1 }
  0x30   : > { %p124_p3 = pnand %p2726_p1, %p123_p12 }
  0x31   : > { %s2255_s27 = sand.u32 (!%p124_p3), 1, %s2106_s7  }
  0x32   : > { %127 = sbr.rel (%p124_p3) target bundleno = 1520 (0x5f0), region = 24  ;;  %s130_s3 = scalar_lea.sflag (!%p124_p3), [#allocation4], %s2255_s27 }
  0x33   : > { %s1924_s29 = smul.u32 (!%p124_p3), 48, %s2255_s27 }
  0x35   : > { %s2259_s4 = scalar_lea.vmem (!%p124_p3), [#allocation3], %s1924_s29 }
  0x39   : > { %2093 = dma.done.wait (%p2190_p8), %s130_s3, 768  }
  0x3a   : > { %2095 = vsyncadd (%p2190_p8), %s130_s3, 4294966528  ;;  %v2127_v0 = vmov 0.0   ;;  %vm2128_vm0 = vmmov 0   ;;  %vm220_vm1 = vcmask 1041409   ;;  %vm223_vm2 = vcmask 1042434   ;;  %s2129_s18 = smov 8  }
  0x3b   : > { %1874 = vmatprep.subr.bf16.mxu0 %v2127_v0  ;;  %1880 = vmatprep.subr.bf16.mxu1 %v2127_v0  ;;  %vm226_vm3 = vcmask 1043459   ;;  %vm229_vm4 = vcmask 1044484   ;;  %vm232_vm5 = vcmask 1045509   ;;  %vm235_vm6 = vcmask 1046534   ;;  %v153_v2 = vld [vmem:[%s2259_s4] sm:$0x1] }
  0x3c   : > { %1876 = vmatprep.mubr.msk.bf16.mxu0 %vm2128_vm0, %v2127_v0  ;;  %1882 = vmatprep.mubr.msk.bf16.mxu1 %vm2128_vm0, %v2127_v0  ;;  %v2272_v1 = vld.sshfl [vmem:[%s2259_s4 + $0x2] sm:$0x1 pattern:$0x76325410]  ;;  %v154_v4 = vld [vmem:[%s2259_s4 + $0x6] sm:$0x1]  ;;  %v161_v18 = vunpack.c.l.bf16 %v153_v2 }
  0x3d   : > { %v2276_v3 = vld.sshfl [vmem:[%s2259_s4 + $0x8] sm:$0x1 pattern:$0x76325410]  ;;  %v305_v6 = vunpack.c.l.b16 %v2272_v1  ;;  %v155_v8 = vld [vmem:[%s2259_s4 + $0xc] sm:$0x1]  ;;  %v162_v23 = vunpack.c.l.bf16 %v154_v4 }
  0x3e   : > { %v2280_v5 = vld.sshfl [vmem:[%s2259_s4 + $0xe] sm:$0x1 pattern:$0x76325410]  ;;  %v306_v7 = vunpack.c.l.b16 %v2276_v3  ;;  %v156_v11 = vld [vmem:[%s2259_s4 + $0x12] sm:$0x1]  ;;  %v163_v28 = vunpack.c.l.bf16 %v155_v8 }
  0x3f   : > { %v2286_v9 = vld.sshfl [vmem:[%s2259_s4 + $0x14] sm:$0x1 pattern:$0x76325410]  ;;  %v307_v10 = vunpack.c.l.b16 %v2280_v5  ;;  %vm238_vm7 = vcmask 1047559   ;;  %vm328_vm8 = vcmask 64512   ;;  %v164_v34 = vunpack.c.l.bf16 %v156_v11 }
  0x40   : > { %v2291_v12 = vld.sshfl [vmem:[%s2259_s4 + $0x1a] sm:$0x1 pattern:$0x76325410]  ;;  %v308_v13 = vunpack.c.l.b16 %v2286_v9  ;;  %v313_v14 = vrot.slane %v306_v7, 7  ;;  %vm477_vm9 = vcmask 1043456  }
  0x41   : > { %v2297_v15 = vld.sshfl [vmem:[%s2259_s4 + $0x20] sm:$0x1 pattern:$0x76325410]  ;;  %v309_v16 = vunpack.c.l.b16 %v2291_v12  ;;  %v315_v17 = vrot.slane %v307_v10, 6  ;;  %s2130_s25 = smov 16  }
  0x42   : > { %v2303_v19 = vld.sshfl [vmem:[%s2259_s4 + $0x26] sm:$0x1 pattern:$0x76325410]  ;;  %v310_v20 = vunpack.c.l.b16 %v2297_v15  ;;  %v314_v21 = vsel %vm220_vm1, %v313_v14, %v305_v6  ;;  %v317_v22 = vrot.slane %v308_v13, 5  ;;  %s2131_s28 = smov 24  }
  0x43   : > { %v2312_v24 = vld.sshfl [vmem:[%s2259_s4 + $0x2c] sm:$0x1 pattern:$0x76325410]  ;;  %v311_v25 = vunpack.c.l.b16 %v2303_v19  ;;  %v316_v26 = vsel %vm223_vm2, %v315_v17, %v314_v21  ;;  %v319_v27 = vrot.slane %v309_v16, 4  ;;  %v679_v1 = vrot.slane %v309_v16, 5 }
  0x44   : > { %v312_v29 = vunpack.c.l.b16 %v2312_v24  ;;  %v318_v30 = vsel %vm226_vm3, %v317_v22, %v316_v26  ;;  %v321_v31 = vrot.slane %v310_v20, 3  ;;  %v157_v32 = vld [vmem:[%s2259_s4 + $0x18] sm:$0x1]  ;;  %v158_v33 = vld [vmem:[%s2259_s4 + $0x1e] sm:$0x1]  ;;  %v681_v9 = vrot.slane %v310_v20, 4 }
  0x45   : > { %v320_v35 = vsel %vm229_vm4, %v319_v27, %v318_v30  ;;  %v323_v36 = vrot.slane %v311_v25, 2  ;;  %v159_v37 = vld [vmem:[%s2259_s4 + $0x24] sm:$0x1]  ;;  %v160_v38 = vld [vmem:[%s2259_s4 + $0x2a] sm:$0x1]  ;;  %v165_v39 = vunpack.c.l.bf16 %v157_v32  ;;  %v166_v40 = vunpack.c.l.bf16 %v158_v33  ;;  %s1717_s30 = sshll.u32 %s2255_s27, 2 }
  0x46   : > { %v322_v41 = vsel %vm232_vm5, %v321_v31, %v320_v35  ;;  %v325_v42 = vrot.slane %v312_v29, 1  ;;  %v167_v43 = vunpack.c.l.bf16 %v159_v37  ;;  %v168_v44 = vunpack.c.l.bf16 %v160_v38  ;;  %v529_v20 = vld [vmem:[%s2259_s4 + $0x2a] sm:$0x1]  ;;  %s1855_s2 = sshll.u32 %s2114_s9, 6  ;;  %s151_s5 = scalar_lea.vmem [#allocation6], %s1717_s30 }
  0x47   : > { %v324_v45 = vsel %vm235_vm6, %v323_v36, %v322_v41  ;;  %v169_v46 = vmul.f32 0.35355338, %v161_v18  ;;  %v170_v47 = vmul.f32 0.35355338, %v162_v23  ;;  %v171_v48 = vmul.f32 0.35355338, %v163_v28  ;;  %s2665_s16 = scalar_lea.hbm %s2715_s1, %s1855_s2 }
  0x48   : > { %v326_v49 = vsel %vm238_vm7, %v325_v42, %v324_v45  ;;  %v172_v50 = vmul.f32 0.35355338, %v164_v34  ;;  %v173_v51 = vmul.f32 0.35355338, %v165_v39  ;;  %v174_v52 = vmul.f32 0.35355338, %v166_v40 }
  0x49   : > { %v327_v53 = vpack.c.b16 %v326_v49, %v326_v49  ;;  %v175_v54 = vmul.f32 0.35355338, %v167_v43  ;;  %v176_v55 = vmul.f32 0.35355338, %v168_v44  ;;  %v195_v56 = vpack.c.bf16 %v169_v46, %v169_v46  ;;  %s1630_s12 = sshll.u32 %s151_s5, 4  ;;  %s1616_s17 = scalar_lea.sflag [#allocation5], %s2255_s27  ;;  %s2667_s12 = int_to_ptr.vmem [resolvable:$true] %s1630_s12 }
  0x4a   : > { %v196_v57 = vpack.c.bf16 %v170_v47, %v170_v47  ;;  %v197_v58 = vpack.c.bf16 %v171_v48, %v171_v48  ;;  %v198_v59 = vpack.c.bf16 %v172_v50, %v172_v50  ;;  %v199_v60 = vpack.c.bf16 %v173_v51, %v173_v51  ;;  %v2352_v51 = vld.sshfl [vmem:[%s2259_s4 + $0xa] sm:$0x1 pattern:$0x76325410]  ;;  %s2040_s22 = scalar_lea.vmem %s2667_s12, 64  ;;  %p2731_p9 = scmp.ne.s32.totalorder %s2723_s19, 0 }
  0x4b   : > { %v333_v61 = vsel %vm328_vm8, %v327_v53, 0  ;;  %v200_v62 = vpack.c.bf16 %v174_v52, %v174_v52  ;;  %v201_v63 = vpack.c.bf16 %v175_v54, %v175_v54  ;;  %v202_v2 = vpack.c.bf16 %v176_v55, %v176_v55  ;;  %v2355_v52 = vld.sshfl [vmem:[%s2259_s4 + $0x10] sm:$0x1 pattern:$0x76325410]  ;;  %p2041_p8 = scmp.ne.s32.totalorder %s2667_s12, %s2040_s22  ;;  %s2132_s9 = smov [#allocation6]  }
  0x4c   : > { %1875 = vmatpush3.bf16.xpose.msra.mxu0 %v333_v61  ;;  %v211_v4 = vunpack.c.l.b16 %v195_v56  ;;  %v212_v8 = vunpack.c.l.b16 %v196_v57  ;;  %v213_v11 = vunpack.c.l.b16 %v197_v58  ;;  %v214_v14 = vunpack.c.l.b16 %v198_v59  ;;  %v2359_v54 = vld.sshfl [vmem:[%s2259_s4 + $0x4] sm:$0x1 pattern:$0x76325410]  ;;  %s2044_s23 = sshll.u32 %s2132_s9, 4  ;;  %s2045_s23 = int_to_ptr.vmem [resolvable:$false] %s2044_s23 }
  0x4d   : > { %v215_v17 = vunpack.c.l.b16 %v199_v60  ;;  %v216_v18 = vunpack.c.l.b16 %v200_v62  ;;  %v217_v21 = vunpack.c.l.b16 %v201_v63  ;;  %1892 = vmatprep.subr.bf16.mxu0 %v2127_v0  ;;  %v218_v22 = vunpack.c.l.b16 %v202_v2  ;;  %v2363_v56 = vld.sshfl [vmem:[%s2259_s4 + $0x16] sm:$0x1 pattern:$0x76325410]  ;;  %p2042_p11 = pnand %p2041_p8, %p2731_p9  ;;  %s2046_s24 = scalar_lea.vmem %s2045_s23, 128 }
  0x4e   : > { %v219_v23 = vrot.slane %v212_v8, 7  ;;  %v222_v26 = vrot.slane %v213_v11, 6  ;;  %v225_v27 = vrot.slane %v214_v14, 5  ;;  %v452_v53 = vunpack.c.l.b16 %v2352_v51  ;;  %p2047_p5 = scmp.lt.s32.totalorder %s2667_s12, %s2045_s23  ;;  %p2048_p13 = scmp.lt.s32.totalorder %s2046_s24, %s2040_s22 }
  0x4f   : > { %v228_v28 = vrot.slane %v215_v17, 4  ;;  %v231_v31 = vrot.slane %v216_v18, 3  ;;  %v234_v33 = vrot.slane %v217_v21, 2  ;;  %v237_v35 = vrot.slane %v218_v22, 1  ;;  %p2043_p0 = pneg %p2042_p11 }
  0x50   : > { %v221_v30 = vsel %vm220_vm1, %v219_v23, %v211_v4  ;;  %v453_v55 = vunpack.c.l.b16 %v2355_v52  ;;  %v451_v57 = vunpack.c.l.b16 %v2359_v54  ;;  %v459_v58 = vrot.slane %v452_v53, 7  ;;  %v2369_v59 = vld.sshfl [vmem:[%s2259_s4 + $0x1c] sm:$0x1 pattern:$0x76325410]  ;;  %p2049_p2 = por %p2048_p13, %p2047_p5 }
  0x51   : > { %v224_v32 = vsel %vm223_vm2, %v222_v26, %v221_v30  ;;  %v454_v60 = vunpack.c.l.b16 %v2363_v56  ;;  %v2375_v62 = vld.sshfl [vmem:[%s2259_s4 + $0x22] sm:$0x1 pattern:$0x76325410]  ;;  %v2720_v63 = vunpack.c.l.b16 %v2369_v59  ;;  %v683_v16 = vrot.slane %v311_v25, 3 }
  0x52   : > { %v227_v34 = vsel %vm226_vm3, %v225_v27, %v224_v32  ;;  %v461_v61 = vrot.slane %v453_v55, 6  ;;  %v460_v2 = vsel %vm220_vm1, %v459_v58, %v451_v57  ;;  %v2382_v4 = vld.sshfl [vmem:[%s2259_s4 + $0x28] sm:$0x1 pattern:$0x76325410]  ;;  %v2719_v8 = vunpack.c.l.b16 %v2375_v62  ;;  %p2050_p4 = pnand %p2049_p2, %p2043_p0 }
  0x53   : > { %v230_v36 = vsel %vm229_vm4, %v228_v28, %v227_v34  ;;  %v463_v14 = vrot.slane %v454_v60, 5  ;;  %v2389_v17 = vld.sshfl [vmem:[%s2259_s4 + $0x2e] sm:$0x1 pattern:$0x76325410]  ;;  %v2718_v18 = vunpack.c.l.b16 %v2382_v4  ;;  %v465_v21 = vrot.slane %v2720_v63, 4 }
  0x54   : > { %v233_v37 = vsel %vm232_vm5, %v231_v31, %v230_v36  ;;  %v462_v11 = vsel %vm223_vm2, %v461_v61, %v460_v2  ;;  %v2717_v22 = vunpack.c.l.b16 %v2389_v17  ;;  %v467_v26 = vrot.slane %v2719_v8, 3 }
  0x55   : > { %v236_v38 = vsel %vm235_vm6, %v234_v33, %v233_v37  ;;  %v464_v23 = vsel %vm226_vm3, %v463_v14, %v462_v11  ;;  %v469_v28 = vrot.slane %v2718_v18, 2  ;;  %v673_v36 = vrot.slane %v305_v6, 1  ;;  %v525_v6 = vld [vmem:[%s2259_s4 + $0x12] sm:$0x1] }
  0x56   : > { %v239_v39 = vsel %vm238_vm7, %v237_v35, %v236_v38  ;;  %v466_v27 = vsel %vm229_vm4, %v465_v21, %v464_v23  ;;  %v471_v31 = vrot.slane %v2717_v22, 1  ;;  %v675_v37 = vrot.slane %v307_v10, 7  ;;  %v526_v10 = vld [vmem:[%s2259_s4 + $0x18] sm:$0x1] }
  0x57   : > { %v240_v40 = vpack.c.b16 %v239_v39, %v239_v39  ;;  %v468_v30 = vsel %vm232_vm5, %v467_v26, %v466_v27  ;;  %v674_v38 = vsel %vm220_vm1, %v306_v7, %v673_v36  ;;  %v522_v39 = vld [vmem:[%s2259_s4] sm:$0x1]  ;;  %v685_v15 = vrot.slane %v312_v29, 2 }
  0x58   : > { %v470_v32 = vsel %vm235_vm6, %v469_v28, %v468_v30  ;;  %v2438_v27 = vld.sshfl [vmem:[%s2259_s4 + $0x2] sm:$0x2 pattern:$0x76325410]  ;;  %v2727_v54 = vunpack.c.l.b16 %v2369_v59  ;;  %v2728_v52 = vunpack.c.l.b16 %v2375_v62  ;;  %vm883_vm10 = vcmask 130112  }
  0x59   : > { %1877 = vmatmul.mubr.msk.bf16.vlgmr.msra.gmra.mrb[0].mxu0 %vm328_vm8, %v240_v40  ;;  %v472_v33 = vsel %vm238_vm7, %v471_v31, %v470_v32  ;;  %v677_v40 = vrot.slane %v308_v13, 6  ;;  %v527_v13 = vld [vmem:[%s2259_s4 + $0x1e] sm:$0x1]  ;;  %v537_v32 = vunpack.c.l.bf16 %v529_v20  ;;  %v888_v20 = vld [vmem:[%s2259_s4 + $0x12] sm:$0x2]  ;;  %vm1246_vm11 = vcmask 195712  }
  0x5a   : > { %1894 = vmatprep.mubr.msk.bf16.mxu0 %vm2128_vm0, %v2127_v0  ;;  %v473_v34 = vpack.c.b16 %v472_v33, %v472_v33  ;;  %v535_v58 = vunpack.c.l.bf16 %v527_v13  ;;  %v2442_v31 = vld.sshfl [vmem:[%s2259_s4 + $0x8] sm:$0x2 pattern:$0x76325410]  ;;  %vm1609_vm12 = vcmask 261312   ;;  %vm1613_vm13 = vcmask 257024  }
  0x5b   : > { %v1029_v36 = vunpack.c.l.b16 %v2442_v31 }
  0x5c   : > { %v479_v35 = vsel %vm477_vm9, %v473_v34, 0  ;;  %v543_v19 = vmul.f32 0.35355338, %v535_v58 }
  0x5d   : > { %1881 = vmatpush3.bf16.msra.mxu1 %v479_v35  ;;  %v1028_v35 = vunpack.c.l.b16 %v2438_v27 }
  0x5e   : > { %1886 = vmatprep.subr.bf16.mxu1 %v2127_v0 }
 0x12c   : > { %v369_v41 = vpop.f32.mrb[0].mxu0 }
 0x12d   : > { %v1878_v42 = vpop.f32.mrb[1].mxu0  ;;  %v375_v43 = vsel %vm328_vm8, %v369_v41, -inf }
 0x12e   : > { %376 = vmax.xlane.f32.xlu0 %v375_v43  ;;  %v372_v44 = vpop.f32.mrb[2].mxu0  ;;  %v524_v42 = vld [vmem:[%s2259_s4 + $0xc] sm:$0x1]  ;;  %v530_v43 = vunpack.c.l.bf16 %v522_v39 }
 0x12f   : > { %v1879_v45 = vpop.f32.mrb[3].mxu0  ;;  %v523_v44 = vld [vmem:[%s2259_s4 + $0x6] sm:$0x1]  ;;  %v532_v3 = vunpack.c.l.bf16 %v524_v42 }
 0x130   : > { %v531_v45 = vunpack.c.l.bf16 %v523_v44  ;;  %v538_v7 = vmul.f32 0.35355338, %v530_v43  ;;  %v2448_v43 = vld.sshfl [vmem:[%s2259_s4 + $0xe] sm:$0x2 pattern:$0x76325410] }
 0x131   : > { %v540_v12 = vmul.f32 0.35355338, %v532_v3 }
 0x132   : > { %v539_v61 = vmul.f32 0.35355338, %v531_v45  ;;  %v562_v2 = vpack.c.bf16 %v538_v7, %v538_v7  ;;  %v1037_v45 = vrot.slane %v1029_v36, 1  ;;  %v886_v7 = vld [vmem:[%s2259_s4 + $0x6] sm:$0x2] }
 0x133   : > { %v564_v26 = vpack.c.bf16 %v540_v12, %v540_v12  ;;  %v2464_v12 = vld.sshfl [vmem:[%s2259_s4 + $0x1a] sm:$0x2 pattern:$0x76325410] }
 0x134   : > { %v563_v25 = vpack.c.bf16 %v539_v61, %v539_v61  ;;  %v578_v30 = vunpack.c.l.b16 %v562_v2  ;;  %v894_v61 = vunpack.c.l.bf16 %v886_v7 }
 0x135   : > { %v580_v34 = vunpack.c.l.b16 %v564_v26  ;;  %v2474_v26 = vld.sshfl [vmem:[%s2259_s4 + $0x20] sm:$0x2 pattern:$0x76325410] }
 0x136   : > { %v579_v39 = vunpack.c.l.b16 %v563_v25  ;;  %v1032_v25 = vunpack.c.l.b16 %v2464_v12 }
 0x137   : > { %v588_v3 = vrot.slane %v580_v34, 7  ;;  %v902_v34 = vmul.f32 0.35355338, %v894_v61 }
 0x1bb   : > { %v377_v46 = vpop.xlane.xlu0 %376 }
 0x1bc   : > { %v378_v47 = vsub.f32 %v369_v41, %v377_v46  ;;  %v676_v41 = vsel %vm223_vm2, %v675_v37, %v674_v38  ;;  %v567_v38 = vpack.c.bf16 %v543_v19, %v543_v19  ;;  %v2478_v19 = vld.sshfl [vmem:[%s2259_s4 + $0x26] sm:$0x2 pattern:$0x76325410] }
 0x1bd   : > { %v678_v5 = vsel %vm226_vm3, %v677_v40, %v676_v41  ;;  %v586_v40 = vrot.slane %v578_v30, 1  ;;  %v545_v41 = vmul.f32 0.35355338, %v537_v32 }
 0x1be   : > { %v379_v48 = vmul.f32 1.442695, %v378_v47  ;;  %v680_v46 = vsel %vm229_vm4, %v679_v1, %v678_v5  ;;  %v528_v47 = vld [vmem:[%s2259_s4 + $0x24] sm:$0x1]  ;;  %v885_v5 = vld [vmem:[%s2259_s4] sm:$0x2]  ;;  %v583_v13 = vunpack.c.l.b16 %v567_v38 }
 0x1bf   : > { %v682_v11 = vsel %vm232_vm5, %v681_v9, %v680_v46  ;;  %v536_v14 = vunpack.c.l.bf16 %v528_v47  ;;  %v2451_v1 = vld.sshfl [vmem:[%s2259_s4 + $0x14] sm:$0x2 pattern:$0x76325410]  ;;  %v587_v46 = vsel %vm220_vm1, %v579_v39, %v586_v40  ;;  %v893_v58 = vunpack.c.l.bf16 %v885_v5  ;;  %v889_v38 = vld [vmem:[%s2259_s4 + $0x18] sm:$0x2] }
 0x1c0   : > { %1994 = vpow2.f32 %v379_v48  ;;  %v533_v48 = vunpack.c.l.bf16 %v525_v6  ;;  %v684_v28 = vsel %vm235_vm6, %v683_v16, %v682_v11  ;;  %v1030_v16 = vunpack.c.l.b16 %v2448_v43  ;;  %v1248_v39 = vld [vmem:[%s2259_s4] sm:$0x2]  ;;  %v1249_v40 = vld [vmem:[%s2259_s4 + $0x6] sm:$0x2]  ;;  %v890_v5 = vld [vmem:[%s2259_s4 + $0x1e] sm:$0x2] }
 0x1c1   : > { %v544_v33 = vmul.f32 0.35355338, %v536_v14  ;;  %v686_v29 = vsel %vm238_vm7, %v685_v15, %v684_v28  ;;  %v569_v11 = vpack.c.bf16 %v545_v41, %v545_v41  ;;  %v589_v14 = vsel %vm223_vm2, %v588_v3, %v587_v46  ;;  %v2494_v41 = vld.sshfl [vmem:[%s2259_s4 + $0x2c] sm:$0x2 pattern:$0x76325410] }
 0x1c2   : > { %v541_v21 = vmul.f32 0.35355338, %v533_v48  ;;  %v687_v6 = vpack.c.b16 %v686_v29, %v686_v29  ;;  %v1031_v48 = vunpack.c.l.b16 %v2451_v1  ;;  %v901_v29 = vmul.f32 0.35355338, %v893_v58 }
 0x1c3   : > { %v568_v42 = vpack.c.bf16 %v544_v33, %v544_v33  ;;  %v926_v46 = vpack.c.bf16 %v902_v34, %v902_v34  ;;  %v1257_v58 = vunpack.c.l.bf16 %v1249_v40  ;;  %v1402_v27 = vrot.slane %v1030_v16, 1 }
 0x1c4   : > { %v565_v24 = vpack.c.bf16 %v541_v21, %v541_v21  ;;  %v2468_v2 = vsel %vm328_vm8, %v687_v6, 0  ;;  %v1040_v30 = vrot.slane %v1031_v48, 7  ;;  %v896_v6 = vunpack.c.l.bf16 %v888_v20 }
 0x1c5   : > { %v2460_v47 = vunpack.c.l.b16 %v568_v42  ;;  %v1033_v42 = vunpack.c.l.b16 %v2474_v26  ;;  %v942_v22 = vunpack.c.l.b16 %v926_v46 }
 0x1c6   : > { %v581_v44 = vunpack.c.l.b16 %v565_v24  ;;  %v887_v24 = vld [vmem:[%s2259_s4 + $0xc] sm:$0x2] }
 0x1c7   : > { %v596_v28 = vrot.slane %v2460_v47, 3  ;;  %v895_v7 = vunpack.c.l.bf16 %v887_v24  ;;  %v1250_v47 = vld [vmem:[%s2259_s4 + $0xc] sm:$0x2]  ;;  %v1407_v12 = vrot.slane %v1033_v42, 6 }
 0x1c9   : > { %v903_v34 = vmul.f32 0.35355338, %v895_v7  ;;  %v1252_v7 = vld [vmem:[%s2259_s4 + $0x18] sm:$0x2] }
 0x1ca   : > { %v2347_v49 = vpop.eup %1994  ;;  %v1260_v31 = vunpack.c.l.bf16 %v1252_v7 }
 0x1cb   : > { %v381_v50 = vsel %vm328_vm8, %v2347_v49, 0.0  ;;  %v927_v46 = vpack.c.bf16 %v903_v34, %v903_v34 }
 0x1cc   : > { %382 = vadd.xlane.f32.xlu0 %v381_v50  ;;  %v534_v50 = vunpack.c.l.bf16 %v526_v10  ;;  %v1036_v10 = vrot.slane %v1028_v35, 2 }
 0x1cd   : > { %v943_v34 = vunpack.c.l.b16 %v927_v46  ;;  %v1255_v46 = vld [vmem:[%s2259_s4 + $0x2a] sm:$0x2] }
 0x1ce   : > { %v542_v23 = vmul.f32 0.35355338, %v534_v50  ;;  %v590_v50 = vrot.slane %v581_v44, 6  ;;  %v1038_v15 = vsel %vm220_vm1, %v1037_v45, %v1036_v10  ;;  %v1034_v44 = vunpack.c.l.b16 %v2478_v19 }
 0x1cf   : > { %v1039_v33 = vsel %vm223_vm2, %v1030_v16, %v1038_v15  ;;  %v1042_v45 = vrot.slane %v1032_v25, 6  ;;  %v898_v15 = vunpack.c.l.bf16 %v890_v5  ;;  %v1265_v5 = vmul.f32 0.35355338, %v1257_v58 }
 0x1d0   : > { %v566_v37 = vpack.c.bf16 %v542_v23, %v542_v23  ;;  %v594_v23 = vrot.slane %v583_v13, 4  ;;  %v591_v32 = vsel %vm226_vm3, %v590_v50, %v589_v14  ;;  %v1041_v10 = vsel %vm226_vm3, %v1040_v30, %v1039_v33 }
 0x1d1   : > { %v925_v13 = vpack.c.bf16 %v901_v29, %v901_v29  ;;  %v1256_v50 = vunpack.c.l.bf16 %v1248_v39  ;;  %v897_v14 = vunpack.c.l.bf16 %v889_v38  ;;  %v1046_v30 = vrot.slane %v1034_v44, 4 }
 0x1d2   : > { %v582_v9 = vunpack.c.l.b16 %v566_v37  ;;  %v2488_v37 = vunpack.c.l.b16 %v569_v11  ;;  %v1035_v11 = vunpack.c.l.b16 %v2494_v41  ;;  %v904_v33 = vmul.f32 0.35355338, %v896_v6 }
 0x1d3   : > { %v1043_v24 = vsel %vm229_vm4, %v1042_v45, %v1041_v10  ;;  %v1258_v39 = vunpack.c.l.bf16 %v1250_v47  ;;  %v941_v40 = vunpack.c.l.b16 %v925_v13  ;;  %v1264_v38 = vmul.f32 0.35355338, %v1256_v50  ;;  %v1251_v47 = vld [vmem:[%s2259_s4 + $0x12] sm:$0x2] }
 0x1d4   : > { %v592_v21 = vrot.slane %v582_v9, 5  ;;  %v891_v9 = vld [vmem:[%s2259_s4 + $0x24] sm:$0x2]  ;;  %v598_v61 = vrot.slane %v2488_v37, 2  ;;  %v905_v8 = vmul.f32 0.35355338, %v897_v14  ;;  %v928_v6 = vpack.c.bf16 %v904_v33, %v904_v33 }
 0x1d5   : > { %v899_v29 = vunpack.c.l.bf16 %v891_v9  ;;  %v906_v63 = vmul.f32 0.35355338, %v898_v15  ;;  %v1399_v10 = vrot.slane %v1028_v35, 3  ;;  %v1400_v45 = vrot.slane %v1029_v36, 2  ;;  %v1253_v35 = vld [vmem:[%s2259_s4 + $0x1e] sm:$0x2] }
 0x1d6   : > { %v593_v3 = vsel %vm229_vm4, %v592_v21, %v591_v32  ;;  %v1044_v21 = vrot.slane %v1033_v42, 5  ;;  %v892_v32 = vld [vmem:[%s2259_s4 + $0x2a] sm:$0x2]  ;;  %v949_v50 = vrot.slane %v941_v40, 2  ;;  %v950_v58 = vrot.slane %v942_v22, 1 }
 0x1d7   : > { %v595_v20 = vsel %vm232_vm5, %v594_v23, %v593_v3  ;;  %v900_v18 = vunpack.c.l.bf16 %v892_v32  ;;  %v907_v13 = vmul.f32 0.35355338, %v899_v29  ;;  %v1288_v14 = vpack.c.bf16 %v1264_v38, %v1264_v38 }
 0x1d8   : > { %v2515_v3 = vsel %vm235_vm6, %v596_v28, %v595_v20  ;;  %v1045_v9 = vsel %vm232_vm5, %v1044_v21, %v1043_v24  ;;  %v1266_v28 = vmul.f32 0.35355338, %v1258_v39  ;;  %v1289_v15 = vpack.c.bf16 %v1265_v5, %v1265_v5 }
 0x1d9   : > { %v908_v20 = vmul.f32 0.35355338, %v900_v18  ;;  %v929_v32 = vpack.c.bf16 %v905_v8, %v905_v8  ;;  %v930_v36 = vpack.c.bf16 %v906_v63, %v906_v63  ;;  %v944_v33 = vunpack.c.l.b16 %v928_v6  ;;  %v1254_v18 = vld [vmem:[%s2259_s4 + $0x24] sm:$0x2] }
 0x1da   : > { %v1401_v21 = vsel %vm220_vm1, %v1400_v45, %v1399_v10  ;;  %v1259_v24 = vunpack.c.l.bf16 %v1251_v47  ;;  %v1047_v29 = vsel %vm235_vm6, %v1046_v30, %v1045_v9  ;;  %v1048_v22 = vrot.slane %v1035_v11, 3 }
 0x1db   : > { %v1290_v39 = vpack.c.bf16 %v1266_v28, %v1266_v28  ;;  %v951_v8 = vsel %vm220_vm1, %v950_v58, %v949_v50  ;;  %v1261_v43 = vunpack.c.l.bf16 %v1253_v35  ;;  %v1304_v16 = vunpack.c.l.b16 %v1288_v14 }
 0x1dc   : > { %v1305_v40 = vunpack.c.l.b16 %v1289_v15  ;;  %v931_v38 = vpack.c.bf16 %v907_v13, %v907_v13  ;;  %v945_v63 = vunpack.c.l.b16 %v929_v32  ;;  %v1403_v5 = vsel %vm223_vm2, %v1402_v27, %v1401_v21 }
 0x1dd   : > { %v932_v6 = vpack.c.bf16 %v908_v20, %v908_v20  ;;  %v946_v10 = vunpack.c.l.b16 %v930_v36  ;;  %v953_v30 = vrot.slane %v944_v33, 7  ;;  %v1267_v45 = vmul.f32 0.35355338, %v1259_v24 }
 0x1de   : > { %v952_v7 = vsel %vm223_vm2, %v943_v34, %v951_v8  ;;  %v1405_v9 = vrot.slane %v1032_v25, 7  ;;  %v1262_v47 = vunpack.c.l.bf16 %v1254_v18  ;;  %v1306_v28 = vunpack.c.l.b16 %v1290_v39 }
 0x1df   : > { %v1404_v13 = vsel %vm226_vm3, %v1031_v48, %v1403_v5  ;;  %v1269_v58 = vmul.f32 0.35355338, %v1261_v43  ;;  %v1312_v14 = vrot.slane %v1304_v16, 3  ;;  %v1313_v15 = vrot.slane %v1305_v40, 2 }
 0x1e0   : > { %v947_v32 = vunpack.c.l.b16 %v931_v38  ;;  %v955_v27 = vrot.slane %v945_v63, 6  ;;  %v1263_v25 = vunpack.c.l.bf16 %v1255_v46  ;;  %v1291_v36 = vpack.c.bf16 %v1267_v45, %v1267_v45 }
 0x1e1   : > { %v1406_v1 = vsel %vm229_vm4, %v1405_v9, %v1404_v13  ;;  %v1270_v21 = vmul.f32 0.35355338, %v1262_v47  ;;  %v1315_v48 = vrot.slane %v1306_v28, 1  ;;  %v1049_v24 = vsel %vm238_vm7, %v1048_v22, %v1047_v29 }
 0x1e2   : > { %v957_v34 = vrot.slane %v946_v10, 5  ;;  %v1293_v39 = vpack.c.bf16 %v1269_v58, %v1269_v58  ;;  %v599_v26 = vsel %vm238_vm7, %v598_v61, %v2515_v3  ;;  %v1409_v8 = vrot.slane %v1034_v44, 5 }
 0x1e3   : > { %v948_v29 = vunpack.c.l.b16 %v932_v6  ;;  %v1408_v22 = vsel %vm232_vm5, %v1407_v12, %v1406_v1  ;;  %v1271_v43 = vmul.f32 0.35355338, %v1263_v25  ;;  %v1307_v16 = vunpack.c.l.b16 %v1291_v36 }
 0x1e4   : > { %v1050_v37 = vpack.c.b16 %v1049_v24, %v1049_v24  ;;  %v959_v61 = vrot.slane %v947_v32, 4  ;;  %v1294_v3 = vpack.c.bf16 %v1270_v21, %v1270_v21  ;;  %v1309_v44 = vunpack.c.l.b16 %v1293_v39 }
 0x1e5   : > { %v600_v38 = vpack.c.b16 %v599_v26, %v599_v26  ;;  %v1410_v63 = vsel %vm235_vm6, %v1409_v8, %v1408_v22  ;;  %v1295_v6 = vpack.c.bf16 %v1271_v43, %v1271_v43 }
 0x1e6   : > { %v1320_v46 = vrot.slane %v1309_v44, 6 }
 0x1e7   : > { %v1311_v47 = vunpack.c.l.b16 %v1295_v6 }
 0x259   : > { %v383_v23 = vpop.xlane.xlu0 %382 }
 0x25a   : > { %1996 = vrcp.f32 %v383_v23  ;;  %v1268_v23 = vmul.f32 0.35355338, %v1260_v31  ;;  %v954_v31 = vsel %vm226_vm3, %v953_v30, %v952_v7  ;;  %v1055_v30 = vsel %vm328_vm8, %v1050_v37, 0 }
 0x25b   : > { %v956_v42 = vsel %vm229_vm4, %v955_v27, %v954_v31  ;;  %v1310_v7 = vunpack.c.l.b16 %v1294_v3 }
 0x25c   : > { %v1292_v35 = vpack.c.bf16 %v1268_v23, %v1268_v23  ;;  %v958_v19 = vsel %vm232_vm5, %v957_v34, %v956_v42  ;;  %v961_v23 = vrot.slane %v948_v29, 3 }
 0x25d   : > { %v960_v45 = vsel %vm235_vm6, %v959_v61, %v958_v19 }
 0x25e   : > { %v1308_v18 = vunpack.c.l.b16 %v1292_v35 }
 0x260   : > { %v1318_v5 = vrot.slane %v1308_v18, 7 }
 0x264   : > { %v1997_v50 = vpop.eup %1996 }
 0x265   : > { %v385_v20 = vmul.f32 %v1997_v50, %v2347_v49  ;;  %v1314_v49 = vsel %vm220_vm1, %v1313_v15, %v1312_v14  ;;  %v1322_v50 = vrot.slane %v1310_v7, 5  ;;  %v1324_v14 = vrot.slane %v1311_v47, 4 }
 0x266   : > { %v1316_v40 = vsel %vm223_vm2, %v1315_v48, %v1314_v49 }
 0x267   : > { %v386_v33 = vpack.c.bf16 %v385_v20, %v385_v20  ;;  %v1317_v10 = vsel %vm226_vm3, %v1307_v16, %v1316_v40 }
 0x268   : > { %v1319_v41 = vsel %vm229_vm4, %v1318_v5, %v1317_v10  ;;  %v818_v10 = vrot.slane %v451_v57, 1  ;;  %v824_v57 = vrot.slane %v2727_v54, 5 }
 0x269   : > { %1883 = vmatmul.mubr.msk.bf16.vlgmr.msra.gmra.mrb[0].mxu1 %vm328_vm8, %v386_v33  ;;  %v1321_v13 = vsel %vm232_vm5, %v1320_v46, %v1319_v41 }
 0x26a   : > { %1887 = vmatpush3.bf16.xpose.msra.mxu1 %v2468_v2  ;;  %1888 = vmatprep.mubr.msk.bf16.mxu1 %vm2128_vm0, %v2127_v0  ;;  %v1411_v2 = vrot.slane %v1035_v11, 4  ;;  %v962_v11 = vsel %vm238_vm7, %v961_v23, %v960_v45  ;;  %v1323_v20 = vsel %vm235_vm6, %v1322_v50, %v1321_v13  ;;  %v820_v45 = vrot.slane %v453_v55, 7  ;;  %v1811_v13 = vld.sshfl [vmem:[%s2259_s4 + $0x4] sm:$0x2 pattern:$0x76325410] }
 0x26b   : > { %1898 = vmatprep.subr.bf16.mxu1 %v2127_v0  ;;  %v963_v58 = vpack.c.b16 %v962_v11, %v962_v11  ;;  %v1325_v32 = vsel %vm238_vm7, %v1324_v14, %v1323_v20  ;;  %v819_v7 = vsel %vm220_vm1, %v452_v53, %v818_v10  ;;  %v826_v55 = vrot.slane %v2728_v52, 4 }
 0x26c   : > { %v1412_v9 = vsel %vm238_vm7, %v1411_v2, %v1410_v63  ;;  %v1326_v27 = vpack.c.b16 %v1325_v32, %v1325_v32  ;;  %v821_v46 = vsel %vm223_vm2, %v820_v45, %v819_v7  ;;  %v2729_v53 = vunpack.c.l.b16 %v2382_v4  ;;  %v1812_v4 = vld.sshfl [vmem:[%s2259_s4 + $0xa] sm:$0x2 pattern:$0x76325410] }
 0x26d   : > { %v1413_v28 = vpack.c.b16 %v1412_v9, %v1412_v9  ;;  %v822_v9 = vrot.slane %v454_v60, 6  ;;  %v2730_v11 = vunpack.c.l.b16 %v2389_v17  ;;  %v1174_v14 = vunpack.c.l.b16 %v1812_v4  ;;  %v1813_v17 = vld.sshfl [vmem:[%s2259_s4 + $0x10] sm:$0x2 pattern:$0x76325410] }
 0x26e   : > { %v828_v56 = vrot.slane %v2729_v53, 3 }
 0x26f   : > { %v1418_v15 = vsel %vm328_vm8, %v1413_v28, 0  ;;  %v823_v41 = vsel %vm226_vm3, %v822_v9, %v821_v46  ;;  %v830_v47 = vrot.slane %v2730_v11, 2  ;;  %v1182_v32 = vrot.slane %v1174_v14, 1 }
 0x270   : > { %v825_v51 = vsel %vm229_vm4, %v824_v57, %v823_v41 }
 0x271   : > { %1889 = vmatmul.mubr.msk.bf16.vlgmr.msra.gmra.mrb[4].mxu1 %vm328_vm8, %v600_v38  ;;  %v827_v60 = vsel %vm232_vm5, %v826_v55, %v825_v51 }
 0x272   : > { %1899 = vmatpush3.bf16.xpose.msra.mxu1 %v1055_v30  ;;  %1900 = vmatprep.mubr.msk.bf16.mxu1 %vm2128_vm0, %v2127_v0  ;;  %v829_v59 = vsel %vm235_vm6, %v828_v56, %v827_v60 }
 0x273   : > { %1910 = vmatprep.subr.bf16.mxu1 %v2127_v0  ;;  %v831_v28 = vsel %vm238_vm7, %v830_v47, %v829_v59 }
 0x274   : > { %v832_v50 = vpack.c.b16 %v831_v28, %v831_v28 }
 0x276   : > { %v837_v62 = vsel %vm477_vm9, %v832_v50, 0 }
 0x277   : > { %1893 = vmatpush3.bf16.msra.mxu0 %v837_v62 }
 0x278   : > { %1904 = vmatprep.subr.bf16.mxu0 %v2127_v0 }
 0x279   : > { %1901 = vmatmul.mubr.msk.bf16.vlgmr.msra.gmra.mrb[8].mxu1 %vm328_vm8, %v963_v58  ;;  %v1173_v58 = vunpack.c.l.b16 %v1811_v13 }
 0x27a   : > { %1911 = vmatpush3.bf16.xpose.msra.mxu1 %v1418_v15  ;;  %1912 = vmatprep.mubr.msk.bf16.mxu1 %vm2128_vm0, %v2127_v0  ;;  %v1814_v15 = vld.sshfl [vmem:[%s2259_s4 + $0x16] sm:$0x2 pattern:$0x76325410] }
 0x27b   : > { %v1181_v20 = vrot.slane %v1173_v58, 2 }
 0x281   : > { %1913 = vmatmul.mubr.msk.bf16.vlgmr.msra.gmra.mrb[12].mxu1 %vm328_vm8, %v1326_v27  ;;  %v1815_v27 = vld.sshfl [vmem:[%s2259_s4 + $0x1c] sm:$0x2 pattern:$0x76325410] }
 0x33c   : > { %v515_v35 = vpop.f32.mrb[0].mxu1 }
 0x33d   : > { %521 = vst.msk [vmem:[#allocation2] sm:$0xff] %vm328_vm8, %v515_v35  ;;  %v1884_v31 = vpop.f32.mrb[1].mxu1  ;;  %v1176_v35 = vunpack.c.l.b16 %v1814_v15 }
 0x33e   : > { %v518_v12 = vpop.f32.mrb[2].mxu1  ;;  %v1175_v31 = vunpack.c.l.b16 %v1813_v17 }
 0x33f   : > { %v1885_v25 = vpop.f32.mrb[3].mxu1  ;;  %v1183_v12 = vsel %vm220_vm1, %v1182_v32, %v1181_v20 }
 0x340   : > { %v1816_v25 = vld.sshfl [vmem:[%s2259_s4 + $0x22] sm:$0x2 pattern:$0x76325410] }
 0x344   : > { %v728_v36 = vpop.f32.mrb[4].mxu1 }
 0x345   : > { %v1890_v33 = vpop.f32.mrb[5].mxu1  ;;  %v734_v1 = vsel %vm328_vm8, %v728_v36, -inf }
 0x346   : > { %735 = vmax.xlane.f32.xlu1 %v734_v1  ;;  %v731_v21 = vpop.f32.mrb[6].mxu1  ;;  %v1185_v33 = vrot.slane %v1176_v35, 7  ;;  %v1184_v1 = vsel %vm223_vm2, %v1175_v31, %v1183_v12 }
 0x347   : > { %v1891_v48 = vpop.f32.mrb[7].mxu1  ;;  %v1817_v21 = vld.sshfl [vmem:[%s2259_s4 + $0x28] sm:$0x2 pattern:$0x76325410] }
 0x348   : > { %v1178_v48 = vunpack.c.l.b16 %v1816_v25 }
 0x34c   : > { %v1091_v24 = vpop.f32.mrb[8].mxu1 }
 0x34d   : > { %v1902_v34 = vpop.f32.mrb[9].mxu1  ;;  %v1097_v39 = vsel %vm328_vm8, %v1091_v24, -inf }
 0x34e   : > { %1098 = vmax.xlane.f32.xlu1 %v1097_v39  ;;  %v1094_v49 = vpop.f32.mrb[10].mxu1  ;;  %v1545_v34 = vrot.slane %v1174_v14, 2 }
 0x34f   : > { %v1903_v26 = vpop.f32.mrb[11].mxu1  ;;  %v1186_v49 = vsel %vm226_vm3, %v1185_v33, %v1184_v1 }
 0x350   : > { %v1818_v26 = vld.sshfl [vmem:[%s2259_s4 + $0x2e] sm:$0x2 pattern:$0x76325410] }
 0x354   : > { %v1454_v42 = vpop.f32.mrb[12].mxu1 }
 0x355   : > { %v1914_v8 = vpop.f32.mrb[13].mxu1  ;;  %v1460_v18 = vsel %vm328_vm8, %v1454_v42, -inf }
 0x356   : > { %1461 = vmax.xlane.f32.xlu0 %v1460_v18  ;;  %v1457_v29 = vpop.f32.mrb[14].mxu1  ;;  %v1547_v8 = vrot.slane %v1175_v31, 1  ;;  %v1189_v18 = vrot.slane %v1178_v48, 5 }
 0x357   : > { %v1915_v22 = vpop.f32.mrb[15].mxu1 }
 0x3d3   : > { %v736_v43 = vpop.xlane.xlu1 %735 }
 0x3d4   : > { %v737_v16 = vsub.f32 %v728_v36, %v736_v43  ;;  %v1177_v36 = vunpack.c.l.b16 %v1815_v27  ;;  %v1180_v43 = vunpack.c.l.b16 %v1818_v26 }
 0x3d6   : > { %v738_v37 = vmul.f32 1.442695, %v737_v16  ;;  %v1187_v39 = vrot.slane %v1177_v36, 6  ;;  %v1556_v54 = vrot.slane %v1180_v43, 4 }
 0x3d8   : > { %1998 = vpow2.f32 %v738_v37  ;;  %v1188_v22 = vsel %vm229_vm4, %v1187_v39, %v1186_v49 }
 0x3db   : > { %v1099_v61 = vpop.xlane.xlu1 %1098 }
 0x3dc   : > { %v1100_v3 = vsub.f32 %v1091_v24, %v1099_v61  ;;  %v1544_v24 = vrot.slane %v1173_v58, 3 }
 0x3de   : > { %v1101_v40 = vmul.f32 1.442695, %v1100_v3  ;;  %v1546_v29 = vsel %vm220_vm1, %v1545_v34, %v1544_v24  ;;  %v1190_v3 = vsel %vm232_vm5, %v1189_v18, %v1188_v22 }
 0x3df   : > { %v1548_v61 = vsel %vm223_vm2, %v1547_v8, %v1546_v29 }
 0x3e0   : > { %2000 = vpow2.f32 %v1101_v40  ;;  %v1550_v40 = vrot.slane %v1177_v36, 7 }
 0x3e2   : > { %v2588_v19 = vpop.eup %1998 }
 0x3e3   : > { %v1462_v2 = vpop.xlane.xlu0 %1461  ;;  %v740_v44 = vsel %vm328_vm8, %v2588_v19, 0.0 }
 0x3e4   : > { %v1463_v38 = vsub.f32 %v1454_v42, %v1462_v2  ;;  %741 = vadd.xlane.f32.xlu1 %v740_v44  ;;  %v1179_v42 = vunpack.c.l.b16 %v1817_v21  ;;  %v1193_v2 = vrot.slane %v1180_v43, 3  ;;  %v1549_v44 = vsel %vm226_vm3, %v1176_v35, %v1548_v61 }
 0x3e6   : > { %v1464_v63 = vmul.f32 1.442695, %v1463_v38  ;;  %v1191_v37 = vrot.slane %v1179_v42, 4  ;;  %v1554_v45 = vrot.slane %v1179_v42, 5 }
 0x3e8   : > { %2002 = vpow2.f32 %v1464_v63  ;;  %v1192_v38 = vsel %vm235_vm6, %v1191_v37, %v1190_v3  ;;  %v1552_v63 = vrot.slane %v1178_v48, 6 }
 0x3e9   : > { %v1194_v10 = vsel %vm238_vm7, %v1193_v2, %v1192_v38 }
 0x3ea   : > { %v2592_v5 = vpop.eup %2000  ;;  %v1195_v9 = vpack.c.b16 %v1194_v10, %v1194_v10 }
 0x3eb   : > { %v1103_v23 = vsel %vm328_vm8, %v2592_v5, 0.0 }
 0x3ec   : > { %1104 = vadd.xlane.f32.xlu0 %v1103_v23  ;;  %v1551_v23 = vsel %vm229_vm4, %v1550_v40, %v1549_v44  ;;  %v1200_v55 = vsel %vm477_vm9, %v1195_v9, 0 }
 0x3ed   : > { %v1553_v7 = vsel %vm232_vm5, %v1552_v63, %v1551_v23 }
 0x3ee   : > { %v1555_v41 = vsel %vm235_vm6, %v1554_v45, %v1553_v7 }
 0x3ef   : > { %v1557_v51 = vsel %vm238_vm7, %v1556_v54, %v1555_v41 }
 0x3f0   : > { %v1558_v56 = vpack.c.b16 %v1557_v51, %v1557_v51 }
 0x3f2   : > { %v2596_v6 = vpop.eup %2002  ;;  %v1563_v47 = vsel %vm477_vm9, %v1558_v56, 0 }
 0x3f3   : > { %v1466_v30 = vsel %vm328_vm8, %v2596_v6, 0.0 }
 0x3f4   : > { %1467 = vadd.xlane.f32.xlu1 %v1466_v30 }
 0x471   : > { %v742_v16 = vpop.xlane.xlu1 %741 }
 0x472   : > { %2004 = vrcp.f32 %v742_v16 }
 0x479   : > { %v1105_v30 = vpop.xlane.xlu0 %1104 }
 0x47a   : > { %2006 = vrcp.f32 %v1105_v30 }
 0x47c   : > { %v2005_v46 = vpop.eup %2004 }
 0x47d   : > { %v744_v57 = vmul.f32 %v2005_v46, %v2588_v19 }
 0x47f   : > { %v745_v52 = vpack.c.bf16 %v744_v57, %v744_v57 }
 0x481   : > { %1895 = vmatmul.mubr.msk.bf16.vlgmr.msra.gmra.mrb[4].mxu0 %vm328_vm8, %v745_v52  ;;  %v1468_v53 = vpop.xlane.xlu1 %1467 }
 0x482   : > { %1905 = vmatpush3.bf16.msra.mxu0 %v1200_v55  ;;  %2008 = vrcp.f32 %v1468_v53  ;;  %1906 = vmatprep.mubr.msk.bf16.mxu0 %vm2128_vm0, %v2127_v0 }
 0x483   : > { %1916 = vmatprep.subr.bf16.mxu0 %v2127_v0 }
 0x484   : > { %v2007_v60 = vpop.eup %2006 }
 0x485   : > { %v1107_v19 = vmul.f32 %v2007_v60, %v2592_v5 }
 0x487   : > { %v1108_v11 = vpack.c.bf16 %v1107_v19, %v1107_v19 }
 0x489   : > { %1907 = vmatmul.mubr.msk.bf16.vlgmr.msra.gmra.mrb[8].mxu0 %vm328_vm8, %v1108_v11 }
 0x48a   : > { %1917 = vmatpush3.bf16.msra.mxu0 %v1563_v47  ;;  %1918 = vmatprep.mubr.msk.bf16.mxu0 %vm2128_vm0, %v2127_v0 }
 0x48c   : > { %v2009_v59 = vpop.eup %2008 }
 0x48d   : > { %v1470_v28 = vmul.f32 %v2009_v59, %v2596_v6 }
 0x48f   : > { %v1471_v50 = vpack.c.bf16 %v1470_v28, %v1470_v28 }
 0x491   : > { %1919 = vmatmul.mubr.msk.bf16.vlgmr.msra.gmra.mrb[12].mxu0 %vm328_vm8, %v1471_v50 }
 0x554   : > { %v873_v62 = vpop.f32.mrb[4].mxu0 }
 0x555   : > { %880 = vrot.lane.b32.xlu0 %v873_v62, %s2129_s18  ;;  %v1896_v13 = vpop.f32.mrb[5].mxu0 }
 0x556   : > { %v876_v5 = vpop.f32.mrb[6].mxu0 }
 0x557   : > { %v1897_v4 = vpop.f32.mrb[7].mxu0 }
 0x55c   : > { %v1236_v58 = vpop.f32.mrb[8].mxu0 }
 0x55d   : > { %1243 = vrot.lane.b32.xlu1 %v1236_v58, %s2130_s25  ;;  %v1908_v14 = vpop.f32.mrb[9].mxu0 }
 0x55e   : > { %v1239_v15 = vpop.f32.mrb[10].mxu0 }
 0x55f   : > { %v1909_v17 = vpop.f32.mrb[11].mxu0 }
 0x564   : > { %v1599_v0 = vpop.f32.mrb[12].mxu0 }
 0x565   : > { %1606 = vrot.lane.b32.xlu1 %v1599_v0, %s2131_s28  ;;  %v1920_v6 = vpop.f32.mrb[13].mxu0 }
 0x566   : > { %v1602_v20 = vpop.f32.mrb[14].mxu0 }
 0x567   : > { %v1921_v32 = vpop.f32.mrb[15].mxu0 }
 0x5c7   : > { %v881_v27 = vpop.permute.xlu0 %880 }
 0x5c8   : > { %884 = vst.msk [vmem:[#allocation2] sm:$0xff] %vm883_vm10, %v881_v27 }
 0x5cf   : > { %v1244_v35 = vpop.permute.xlu1 %1243 }
 0x5d0   : > { %1247 = vst.msk [vmem:[#allocation2] sm:$0xff] %vm1246_vm11, %v1244_v35 }
 0x5d7   : > { %v1607_v31 = vpop.permute.xlu1 %1606 }
 0x5d8   : > { %1610 = vst.msk [vmem:[#allocation2] sm:$0xff] %vm1609_vm12, %v1607_v31 }
 0x5df   : > { %v1611_v12 = vld [vmem:[#allocation2] sm:$0xff] }
 0x5e0   : > { %v1612_v25 = vpack.c.bf16 %v1611_v12, %v1611_v12 }
 0x5e2   : > { %1614 = vst.msk [vmem:[%s151_s5] sm:$0xf] %vm1613_vm13, %v1612_v25 }
 0x5e3   : > { %2053 = shalt.err (!%p2050_p4)
}
 0x5e4   : > { %s2054_s26 = scalar_lea.hbm %s2665_s16, 64  ;;  %s2058_s3 = scalar_lea.hbm %s2715_s1, 128 }
 0x5e5   : > { %p2055_p6 = scmp.ne.s32.totalorder %s2665_s16, %s2054_s26  ;;  %p2059_p12 = scmp.lt.u32.totalorder %s2665_s16, %s2715_s1 }
 0x5e6   : > { %p2060_p1 = scmp.lt.u32.totalorder %s2058_s3, %s2054_s26  ;;  %p2062_p8 = scmp.lt.u32.totalorder %s2054_s26, %s2665_s16 }
 0x5e7   : > { %p2056_p7 = pnand %p2055_p6, %p2731_p9 }
 0x5e8   : > { %p2061_p3 = por %p2060_p1, %p2059_p12 }
 0x5e9   : > { %p2057_p10 = pneg %p2056_p7 }
 0x5ea   : > { %p2063_p11 = por %p2062_p8, %p2061_p3 }
 0x5ec   : > { %p2064_p0 = pnand %p2063_p11, %p2057_p10 }
 0x5ee   : > { %2067 = shalt.err (!%p2064_p0)
}
 0x5ef   : > { %1927 = dma.vmem_to_hbm [thread:$0]  (%p2731_p9), %s2667_s12, 64, %s2665_s16, %s1616_s17  }
 0x5f0 PF: > { %s1642_s25 = sand.u32 1, %s2102_s6   ;;  %p2732_p5 = scmp.ne.s32.totalorder %s2724_s21, 0 }
 0x5f1   : > { %p2733_p13 = scmp.ge.s32.totalorder %s2122_s11, 2  ;;  %s1643_s28 = scalar_lea.sflag [#allocation5], %s1642_s25 }
 0x5f3   : > { %p1934_p2 = pnand %p2733_p13, %p2732_p5 }
 0x5f5   : > { %2097 = dma.done.wait (!%p1934_p2), %s1643_s28, 64  }
 0x5f6   : > { %2099 = vsyncadd (!%p1934_p2), %s1643_s28, 4294967232  ;;  %s17_s11 = sadd.s32 1, %s2122_s11   ;;  %s2734_s6 = smov %s2106_s7 }
 0x5f7   : > { %p14_p4 = scmp.ge.s32.totalorder %s17_s11, 4   ;;  %s2735_s7 = smov %s2110_s8 }
 0x5f8   : > { %s2736_s8 = smov %s2199_s20  ;;  %s2737_s9 = smov %s2118_s10 }
 0x5f9   : > { %s2738_s10 = smov %s2740_s14  ;;  %16 = sbr.rel (!%p14_p4) target bundleno = 6 (0x6), region = 71 }
 0x600   :  { %1648 = vsyncpa [#allocation4], 1 }
 0x601   :  { %1650 = vsyncpa [#allocation4 + $0x1], 1 }
 0x602   :  { %1651 = vsyncpa [#allocation5], 1 }
 0x603   :  { %1653 = vsyncpa [#allocation5 + $0x1], 1 }

</bundles_post_ra>
